<compile_context>
chip_gen: v7x
topology: tpu7x:2x2x1
jax: 0.10.0
libtpu: 0.0.40
codegen_flags: <defaults>
</compile_context>

<pallas_src>
import functools

import jax
import jax.numpy as jnp
from jax.experimental import pallas as pl
from jax.experimental.pallas import tpu as pltpu


def _round_up(x, m):
    return (x + m - 1) // m * m


def _dir_gat_kernel(x_ref, xt_ref, w_ref, attdst_ref, csrct_ref, bias_ref,
                    adj_ref,                                        # inputs
                    o_ref,                                          # output
                    xl_ref, asrc_t_ref,                             # scratch
                    *, heads, out_dim, alpha, tile_i, out_pad,
                    neg_slope=0.2):
    hf = heads * out_dim
    i = pl.program_id(0)          # destination row tile
    d = pl.program_id(1)          # direction: 0 = src->dst, 1 = dst->src
    is_fwd = d == 0

    # ---- fused projection + transposed source logits, once per row tile -----
    @pl.when(is_fwd)
    def _():
        xl_ref[...] = jnp.dot(x_ref[...], w_ref[...],
                              preferred_element_type=jnp.float32)    # [Np, 2HF]
        # a_src for both dirs/heads, produced directly in transposed layout
        # (att_src was folded through W in the wrapper): [2H, Np]
        asrc_t_ref[...] = jnp.dot(csrct_ref[...], xt_ref[...],
                                  preferred_element_type=jnp.float32)

    xl_all = xl_ref[...]                                             # [Np, 2HF]
    asrc_t = asrc_t_ref[...]                                         # [2H, Np]

    row0 = pl.multiple_of(i * tile_i, tile_i)
    xl_tile = xl_ref[pl.ds(row0, tile_i), :]                         # [Ti, 2HF]
    adst_tile = jnp.dot(xl_tile, attdst_ref[...],
                        preferred_element_type=jnp.float32)          # [Ti, 2H]

    # int8 adjacency -> boolean edge mask (computed once, reused per head)
    edge_mask = adj_ref[...].astype(jnp.int32) != 0                  # [Ti, Np]

    head_outs = []
    for h in range(heads):                                           # static unroll
        # pick this (head, direction)'s logit pieces with static slices + select
        a_dst = jnp.where(is_fwd,
                          adst_tile[:, h:h + 1],
                          adst_tile[:, heads + h:heads + h + 1])     # [Ti, 1]
        a_src = jnp.where(is_fwd,
                          asrc_t[h:h + 1, :],
                          asrc_t[heads + h:heads + h + 1, :])        # [1, Np]

        e = a_dst + a_src                                            # [Ti, Np]
        e = jnp.where(e > 0, e, neg_slope * e)                       # LeakyReLU(0.2)
        e = jnp.where(edge_mask, e, jnp.float32(-1e30))              # mask non-edges
        e = e - jnp.max(e, axis=1, keepdims=True)
        p = jnp.exp(e)                     # masked entries underflow to 0 exactly
        denom = jnp.sum(p, axis=1, keepdims=True)                    # [Ti, 1]

        xl_h = jnp.where(is_fwd,
                         xl_all[:, h * out_dim:(h + 1) * out_dim],
                         xl_all[:, hf + h * out_dim:hf + (h + 1) * out_dim])

        # aggregate un-normalized in bf16 (f32 accumulation), normalize after
        agg = jnp.dot(p.astype(jnp.bfloat16), xl_h.astype(jnp.bfloat16),
                      preferred_element_type=jnp.float32)            # [Ti, F]
        head_outs.append(agg * pl.reciprocal(denom, approx=True))

    out = jnp.concatenate(head_outs, axis=1)                         # [Ti, H*F]
    if out_pad > hf:                                                 # lane-dense slab
        out = jnp.concatenate(
            [out, jnp.zeros((tile_i, out_pad - hf), jnp.float32)], axis=1)

    scale = jnp.where(is_fwd, 1.0 - alpha, alpha).astype(jnp.float32)
    contrib = scale * out                                            # [Ti, out_pad]

    # accumulate directly in the resident output buffer (same block across d)
    @pl.when(is_fwd)
    def _():
        o_ref[...] = contrib

    @pl.when(d == pl.num_programs(1) - 1)
    def _():
        # single dense (>=128-lane) store per row tile; bias already blended
        o_ref[...] = o_ref[...] + contrib + bias_ref[...]


def dir_gat_conv(x, edge_index, params, *, heads, out_dim, alpha):
    """DirGATConv.forward: (1-a)*GAT(x, E) + a*GAT(x, E^T)."""
    n, d_in = x.shape
    hf = heads * out_dim

    # ---- padded / tiled sizes ------------------------------------------------
    n_pad = _round_up(max(n, 8), 128)
    if n_pad > 512:                      # big graphs: 512-row tiles (v7x-safe VMEM)
        n_pad = _round_up(n_pad, 512)
        tile_i = 512
    else:
        tile_i = n_pad
    out_pad = _round_up(hf, 128)         # lane-dense output slab
    n_tiles = n_pad // tile_i

    # ---- inputs (plain-JAX glue) ----------------------------------------------
    src = edge_index[0]
    dst = edge_index[1]
    diag = jnp.arange(n_pad)
    # int8 adjacency, self-loops on the whole (padded) diagonal so every row's
    # softmax is well defined (padding rows are sliced away at the end).
    adj_fwd = (jnp.zeros((n_pad, n_pad), jnp.int8)
               .at[dst, src].set(1).at[diag, diag].set(1))
    adj_rev = (jnp.zeros((n_pad, n_pad), jnp.int8)
               .at[src, dst].set(1).at[diag, diag].set(1))
    adj_all = jnp.stack([adj_fwd, adj_rev], axis=0)                  # [2, Np, Np]

    (w1, att_src1, att_dst1, b1), (w2, att_src2, att_dst2, b2) = params
    w1 = w1.astype(jnp.float32)
    w2 = w2.astype(jnp.float32)

    # fused projection: x @ [W1 | W2] -> [N, 2*H*F]
    w_all = jnp.concatenate([w1, w2], axis=1)                        # [D, 2HF]

    def block_diag_att(att):             # [H, F] -> block-diagonal [H*F, H]
        m = jnp.zeros((hf, heads), jnp.float32)
        for h in range(heads):
            m = m.at[h * out_dim:(h + 1) * out_dim, h].set(att[h])
        return m

    # dst-side attention applied to xl in-kernel: columns = [dst_d0 | dst_d1]
    att_dst_all = jnp.zeros((2 * hf, 2 * heads), jnp.float32)
    att_dst_all = att_dst_all.at[:hf, :heads].set(
        block_diag_att(att_dst1.astype(jnp.float32)))
    att_dst_all = att_dst_all.at[hf:, heads:].set(
        block_diag_att(att_dst2.astype(jnp.float32)))

    # src-side attention folded through W, applied to x^T in-kernel:
    #   asrc_t = c_src^T @ x^T  ->  [2H, Np]  (no in-kernel transpose needed)
    c_src = jnp.concatenate(
        [w1 @ block_diag_att(att_src1.astype(jnp.float32)),
         w2 @ block_diag_att(att_src2.astype(jnp.float32))], axis=1)  # [D, 2H]
    c_src_t = c_src.T                                                 # [2H, D]

    bias_blend = ((1.0 - alpha) * b1.astype(jnp.float32)
                  + alpha * b2.astype(jnp.float32))                   # [H*F]
    bias_pad = jnp.zeros((1, out_pad), jnp.float32).at[0, :hf].set(bias_blend)

    x_pad = jnp.zeros((n_pad, d_in), jnp.float32).at[:n, :].set(
        x.astype(jnp.float32))
    x_t_pad = x_pad.T                                                 # [D, Np]

    # ---- cost estimate (advisory) ----------------------------------------------
    flops = (2 * n_pad * d_in * 2 * hf * n_tiles          # x @ [W1|W2] per row tile
             + 2 * 2 * heads * d_in * n_pad * n_tiles     # c_src^T @ x^T
             + 2 * 2 * tile_i * 2 * hf * 2 * heads * n_tiles   # dst logits
             + 4 * heads * out_dim * n_pad * n_pad        # aggregation (both dirs)
             + 16 * heads * n_pad * n_pad)                # N^2 elementwise work
    transcendentals = 2 * heads * n_pad * n_pad           # exp per head per dir
    bytes_accessed = (2 * n_pad * n_pad                   # int8 adjacencies
                      + 4 * (2 * n_pad * d_in + n_pad * out_pad)
                      + 4 * (d_in * 2 * hf + 2 * hf * 2 * heads
                             + 2 * heads * d_in + out_pad))
    cost = pl.CostEstimate(flops=int(flops),
                           transcendentals=int(transcendentals),
                           bytes_accessed=int(bytes_accessed))

    kernel = functools.partial(_dir_gat_kernel, heads=heads, out_dim=out_dim,
                               alpha=float(alpha), tile_i=tile_i,
                               out_pad=out_pad)

    out_padded = pl.pallas_call(
        kernel,
        out_shape=jax.ShapeDtypeStruct((n_pad, out_pad), jnp.float32),
        grid_spec=pltpu.PrefetchScalarGridSpec(
            num_scalar_prefetch=0,
            grid=(n_tiles, 2),                                    # (row tiles, dirs)
            in_specs=[
                pl.BlockSpec((n_pad, d_in), lambda i, d: (0, 0)),         # x
                pl.BlockSpec((d_in, n_pad), lambda i, d: (0, 0)),         # x^T
                pl.BlockSpec((d_in, 2 * hf), lambda i, d: (0, 0)),        # W fused
                pl.BlockSpec((2 * hf, 2 * heads), lambda i, d: (0, 0)),   # att_dst
                pl.BlockSpec((2 * heads, d_in), lambda i, d: (0, 0)),     # c_src^T
                pl.BlockSpec((1, out_pad), lambda i, d: (0, 0)),          # bias
                pl.BlockSpec((None, tile_i, n_pad),                       # adjacency
                             lambda i, d: (d, i, 0)),
            ],
            out_specs=pl.BlockSpec((tile_i, out_pad), lambda i, d: (i, 0)),
            scratch_shapes=[
                pltpu.VMEM((n_pad, 2 * hf), jnp.float32),      # xl (both dirs)
                pltpu.VMEM((2 * heads, n_pad), jnp.float32),   # a_src transposed
            ]),
        compiler_params=pltpu.CompilerParams(
            dimension_semantics=("parallel", "arbitrary"),
            vmem_limit_bytes=64 * 1024 * 1024),
        cost_estimate=cost,
    )(x_pad, x_t_pad, w_all, att_dst_all, c_src_t, bias_pad, adj_all)

    return out_padded[:n, :hf]


# ----------------------------- pure-JAX reference -----------------------------
def _ref_gat(x, w, att_src, att_dst, bias, adj, heads, out_dim):
    n = x.shape[0]
    xl = (x @ w).reshape(n, heads, out_dim)
    a_src = (xl * att_src[None]).sum(-1)                  # [N, H]
    a_dst = (xl * att_dst[None]).sum(-1)                  # [N, H]
    e = a_dst[:, None, :] + a_src[None, :, :]             # [N(dst), N(src), H]
    e = jnp.where(e > 0, e, 0.2 * e)
    mask = adj[..., None] > 0
    e = jnp.where(mask, e, -1e30)
    e = e - e.max(axis=1, keepdims=True)
    p = jnp.where(mask, jnp.exp(e), 0.0)
    p = p / p.sum(axis=1, keepdims=True)
    out = jnp.einsum('ijh,jhf->ihf', p, xl)
    return out.reshape(n, heads * out_dim) + bias


if __name__ == "__main__":
    N, D_IN, OUT_DIM, HEADS, ALPHA, E = 16, 32, 8, 2, 0.3, 48
    key = jax.random.PRNGKey(0)
    ks = jax.random.split(key, 10)

    def glorot(k, shape):
        limit = (6.0 / (shape[0] + shape[-1])) ** 0.5
        return jax.random.uniform(k, shape, jnp.float32, -limit, limit)

    # GATConv params (lin has no bias; att_src/att_dst: [heads, out]; bias zeros)
    w1 = glorot(ks[0], (D_IN, HEADS * OUT_DIM))
    att_src1 = glorot(ks[1], (HEADS, OUT_DIM))
    att_dst1 = glorot(ks[2], (HEADS, OUT_DIM))
    b1 = jnp.zeros((HEADS * OUT_DIM,), jnp.float32)
    w2 = glorot(ks[3], (D_IN, HEADS * OUT_DIM))
    att_src2 = glorot(ks[4], (HEADS, OUT_DIM))
    att_dst2 = glorot(ks[5], (HEADS, OUT_DIM))
    b2 = jnp.zeros((HEADS * OUT_DIM,), jnp.float32)

    x = jax.random.normal(ks[6], (N, D_IN), jnp.float32)
    src = jax.random.randint(ks[7], (E,), 0, N)
    dst = jax.random.randint(ks[8], (E,), 0, N)
    edge_index = jnp.stack([src, dst], axis=0)

    params = ((w1, att_src1, att_dst1, b1), (w2, att_src2, att_dst2, b2))
    out = dir_gat_conv(x, edge_index, params,
                       heads=HEADS, out_dim=OUT_DIM, alpha=ALPHA)
    out = jax.block_until_ready(out)

    # verify against pure-JAX dense reference (bf16 aggregation + approx
    # reciprocal in the kernel -> slightly looser tolerance)
    diag = jnp.arange(N)
    adj_f = (jnp.zeros((N, N), jnp.float32)
             .at[dst, src].set(1.0).at[diag, diag].set(1.0))
    adj_r = (jnp.zeros((N, N), jnp.float32)
             .at[src, dst].set(1.0).at[diag, diag].set(1.0))
    ref = ((1.0 - ALPHA) * _ref_gat(x, w1, att_src1, att_dst1, b1, adj_f,
                                    HEADS, OUT_DIM)
           + ALPHA * _ref_gat(x, w2, att_src2, att_dst2, b2, adj_r,
                              HEADS, OUT_DIM))
    assert out.shape == (N, HEADS * OUT_DIM)
    max_err = float(jnp.max(jnp.abs(out - ref)))
    assert jnp.allclose(out, ref, atol=2e-2, rtol=2e-2), (
        "mismatch vs reference, max abs err = %g" % max_err)

    print("KERNEL_OK")
</pallas_src>

<mosaic_0001>
module attributes {stable_mosaic.version = 11 : i64} {
  func.func @_dir_gat_kernel(%arg0: i32, %arg1: i32, %arg2: memref<128x32xf32, #tpu.memory_space<vmem>>, %arg3: memref<32x128xf32, #tpu.memory_space<vmem>>, %arg4: memref<32x32xf32, #tpu.memory_space<vmem>>, %arg5: memref<32x4xf32, #tpu.memory_space<vmem>>, %arg6: memref<4x32xf32, #tpu.memory_space<vmem>>, %arg7: memref<1x128xf32, #tpu.memory_space<vmem>>, %arg8: memref<1x128x128xi8, #tpu.memory_space<vmem>>, %arg9: memref<128x128xf32, #tpu.memory_space<vmem>>, %arg10: memref<128x32xf32, #tpu.memory_space<vmem>>, %arg11: memref<4x128xf32, #tpu.memory_space<vmem>>) attributes {dimension_semantics = [#tpu.dimension_semantics<parallel>, #tpu.dimension_semantics<arbitrary>], iteration_bounds = array<i64: 1, 2>, scalar_prefetch = 0 : i64, scratch_operands = 2 : i64, tpu.core_type = #tpu.core_type<tc>, window_params = [{pipeline_mode = #tpu.pipeline_mode<synchronous>, transform_indices = @transform_0, window_bounds = array<i64: 128, 32>}, {pipeline_mode = #tpu.pipeline_mode<synchronous>, transform_indices = @transform_1, window_bounds = array<i64: 32, 128>}, {pipeline_mode = #tpu.pipeline_mode<synchronous>, transform_indices = @transform_2, window_bounds = array<i64: 32, 32>}, {pipeline_mode = #tpu.pipeline_mode<synchronous>, transform_indices = @transform_3, window_bounds = array<i64: 32, 4>}, {pipeline_mode = #tpu.pipeline_mode<synchronous>, transform_indices = @transform_4, window_bounds = array<i64: 4, 32>}, {pipeline_mode = #tpu.pipeline_mode<synchronous>, transform_indices = @transform_5, window_bounds = array<i64: 1, 128>}, {transform_indices = @transform_6, window_bounds = array<i64: 1, 128, 128>}, {transform_indices = @transform_7, window_bounds = array<i64: 128, 128>}]} {
    %c0_i32 = arith.constant 0 : i32
    %0 = arith.cmpi eq, %arg1, %c0_i32 : i32
    %1 = arith.extui %0 : i1 to i32
    %c0_i32_0 = arith.constant 0 : i32
    %2 = arith.cmpi ne, %1, %c0_i32_0 : i32
    scf.if %2 {
      %c0_28 = arith.constant 0 : index
      %c0_29 = arith.constant 0 : index
      %91 = vector.load %arg2[%c0_28, %c0_29] : memref<128x32xf32, #tpu.memory_space<vmem>>, vector<128x32xf32>
      %c0_30 = arith.constant 0 : index
      %c0_31 = arith.constant 0 : index
      %92 = vector.load %arg4[%c0_30, %c0_31] : memref<32x32xf32, #tpu.memory_space<vmem>>, vector<32x32xf32>
      %cst_32 = arith.constant dense<0.000000e+00> : vector<128x32xf32>
      %93 = tpu.matmul %91, %92, %cst_32 {dimension_numbers = #tpu.dot_dimension_numbers<[1], [0], [0], [1], [0, 0, 1, 1], [], []>} : vector<128x32xf32>, vector<32x32xf32>, vector<128x32xf32> -> vector<128x32xf32>
      %c0_33 = arith.constant 0 : index
      %c0_34 = arith.constant 0 : index
      %94 = vector.load %arg10[%c0_33, %c0_34] : memref<128x32xf32, #tpu.memory_space<vmem>>, vector<128x32xf32>
      tpu.vector_store %arg10[%c0_33, %c0_34], %93 {strides = array<i32>} : memref<128x32xf32, #tpu.memory_space<vmem>>, vector<128x32xf32>,
      %c0_35 = arith.constant 0 : index
      %c0_36 = arith.constant 0 : index
      %95 = vector.load %arg6[%c0_35, %c0_36] : memref<4x32xf32, #tpu.memory_space<vmem>>, vector<4x32xf32>
      %c0_37 = arith.constant 0 : index
      %c0_38 = arith.constant 0 : index
      %96 = vector.load %arg3[%c0_37, %c0_38] : memref<32x128xf32, #tpu.memory_space<vmem>>, vector<32x128xf32>
      %cst_39 = arith.constant dense<0.000000e+00> : vector<4x128xf32>
      %97 = tpu.matmul %95, %96, %cst_39 {dimension_numbers = #tpu.dot_dimension_numbers<[1], [0], [0], [1], [0, 0, 1, 1], [], []>} : vector<4x32xf32>, vector<32x128xf32>, vector<4x128xf32> -> vector<4x128xf32>
      %c0_40 = arith.constant 0 : index
      %c0_41 = arith.constant 0 : index
      %98 = vector.load %arg11[%c0_40, %c0_41] : memref<4x128xf32, #tpu.memory_space<vmem>>, vector<4x128xf32>
      tpu.vector_store %arg11[%c0_40, %c0_41], %97 {strides = array<i32>} : memref<4x128xf32, #tpu.memory_space<vmem>>, vector<4x128xf32>,
    } else {
    }
    %c0 = arith.constant 0 : index
    %c0_1 = arith.constant 0 : index
    %3 = vector.load %arg10[%c0, %c0_1] : memref<128x32xf32, #tpu.memory_space<vmem>>, vector<128x32xf32>
    %c0_2 = arith.constant 0 : index
    %c0_3 = arith.constant 0 : index
    %4 = vector.load %arg11[%c0_2, %c0_3] : memref<4x128xf32, #tpu.memory_space<vmem>>, vector<4x128xf32>
    %c128_i32 = arith.constant 128 : i32
    %5 = arith.muli %arg0, %c128_i32 : i32
    %6 = tpu.assume_multiple %5, 128 : i32
    %7 = arith.index_cast %6 : i32 to index
    %c0_4 = arith.constant 0 : index
    %8 = vector.load %arg10[%7, %c0_4] : memref<128x32xf32, #tpu.memory_space<vmem>>, vector<128x32xf32>
    %c0_5 = arith.constant 0 : index
    %c0_6 = arith.constant 0 : index
    %9 = vector.load %arg5[%c0_5, %c0_6] : memref<32x4xf32, #tpu.memory_space<vmem>>, vector<32x4xf32>
    %cst = arith.constant dense<0.000000e+00> : vector<128x4xf32>
    %10 = tpu.matmul %8, %9, %cst {dimension_numbers = #tpu.dot_dimension_numbers<[1], [0], [0], [1], [0, 0, 1, 1], [], []>} : vector<128x32xf32>, vector<32x4xf32>, vector<128x4xf32> -> vector<128x4xf32>
    %c0_7 = arith.constant 0 : index
    %c0_8 = arith.constant 0 : index
    %c0_9 = arith.constant 0 : index
    %11 = vector.load %arg8[%c0_7, %c0_8, %c0_9] : memref<1x128x128xi8, #tpu.memory_space<vmem>>, vector<1x128x128xi8>
    %12 = vector.shape_cast %11 : vector<1x128x128xi8> to vector<128x128xi8>
    %13 = arith.extsi %12 : vector<128x128xi8> to vector<128x128xi32>
    %c0_i32_10 = arith.constant 0 : i32
    %14 = vector.broadcast %c0_i32_10 : i32 to vector<128x128xi32>
    %15 = arith.cmpi ne, %13, %14 : vector<128x128xi32>
    %16 = vector.extract_strided_slice %10 {offsets = [0, 0], sizes = [128, 1], strides = [1, 1]} : vector<128x4xf32> to vector<128x1xf32>
    %17 = vector.extract_strided_slice %10 {offsets = [0, 2], sizes = [128, 1], strides = [1, 1]} : vector<128x4xf32> to vector<128x1xf32>
    %18 = arith.select %0, %16, %17 : vector<128x1xf32>
    %19 = vector.extract_strided_slice %4 {offsets = [0, 0], sizes = [1, 128], strides = [1, 1]} : vector<4x128xf32> to vector<1x128xf32>
    %20 = vector.extract_strided_slice %4 {offsets = [2, 0], sizes = [1, 128], strides = [1, 1]} : vector<4x128xf32> to vector<1x128xf32>
    %21 = arith.select %0, %19, %20 : vector<1x128xf32>
    %22 = vector.broadcast %18 : vector<128x1xf32> to vector<128x128xf32>
    %23 = vector.broadcast %21 : vector<1x128xf32> to vector<128x128xf32>
    %24 = arith.addf %22, %23 : vector<128x128xf32>
    %cst_11 = arith.constant 0.000000e+00 : f32
    %25 = vector.broadcast %cst_11 : f32 to vector<128x128xf32>
    %26 = arith.cmpf ogt, %24, %25 : vector<128x128xf32>
    %cst_12 = arith.constant 2.000000e-01 : f32
    %27 = vector.broadcast %cst_12 : f32 to vector<128x128xf32>
    %28 = arith.mulf %27, %24 : vector<128x128xf32>
    %29 = arith.select %26, %24, %28 : vector<128x128xi1>, vector<128x128xf32>
    %cst_13 = arith.constant -1.000000e+30 : f32
    %30 = vector.broadcast %cst_13 : f32 to vector<128x128xf32>
    %31 = arith.select %15, %29, %30 : vector<128x128xi1>, vector<128x128xf32>
    %cst_14 = arith.constant dense<0xFF800000> : vector<128xf32>
    %32 = vector.multi_reduction <maximumf>, %31, %cst_14 [1] : vector<128x128xf32> to vector<128xf32>
    %33 = vector.shape_cast %32 : vector<128xf32> to vector<128x1xf32>
    %34 = vector.broadcast %33 : vector<128x1xf32> to vector<128x128xf32>
    %35 = arith.subf %31, %34 : vector<128x128xf32>
    %36 = math.exp %35 : vector<128x128xf32>
    %cst_15 = arith.constant dense<0.000000e+00> : vector<128xf32>
    %37 = vector.multi_reduction <add>, %36, %cst_15 [1] : vector<128x128xf32> to vector<128xf32>
    %38 = vector.shape_cast %37 : vector<128xf32> to vector<128x1xf32>
    %39 = vector.extract_strided_slice %3 {offsets = [0, 0], sizes = [128, 8], strides = [1, 1]} : vector<128x32xf32> to vector<128x8xf32>
    %40 = vector.extract_strided_slice %3 {offsets = [0, 16], sizes = [128, 8], strides = [1, 1]} : vector<128x32xf32> to vector<128x8xf32>
    %41 = arith.select %0, %39, %40 : vector<128x8xf32>
    %42 = arith.truncf %36 : vector<128x128xf32> to vector<128x128xbf16>
    %43 = arith.truncf %41 : vector<128x8xf32> to vector<128x8xbf16>
    %cst_16 = arith.constant dense<0.000000e+00> : vector<128x8xf32>
    %44 = tpu.matmul %42, %43, %cst_16 {dimension_numbers = #tpu.dot_dimension_numbers<[1], [0], [0], [1], [0, 0, 1, 1], [], []>} : vector<128x128xbf16>, vector<128x8xbf16>, vector<128x8xf32> -> vector<128x8xf32>
    %45 = tpu.reciprocal %38 {approx = true} : vector<128x1xf32> -> vector<128x1xf32>
    %46 = vector.broadcast %45 : vector<128x1xf32> to vector<128x8xf32>
    %47 = arith.mulf %44, %46 : vector<128x8xf32>
    %48 = vector.extract_strided_slice %10 {offsets = [0, 1], sizes = [128, 1], strides = [1, 1]} : vector<128x4xf32> to vector<128x1xf32>
    %49 = vector.extract_strided_slice %10 {offsets = [0, 3], sizes = [128, 1], strides = [1, 1]} : vector<128x4xf32> to vector<128x1xf32>
    %50 = arith.select %0, %48, %49 : vector<128x1xf32>
    %51 = vector.extract_strided_slice %4 {offsets = [1, 0], sizes = [1, 128], strides = [1, 1]} : vector<4x128xf32> to vector<1x128xf32>
    %52 = vector.extract_strided_slice %4 {offsets = [3, 0], sizes = [1, 128], strides = [1, 1]} : vector<4x128xf32> to vector<1x128xf32>
    %53 = arith.select %0, %51, %52 : vector<1x128xf32>
    %54 = vector.broadcast %50 : vector<128x1xf32> to vector<128x128xf32>
    %55 = vector.broadcast %53 : vector<1x128xf32> to vector<128x128xf32>
    %56 = arith.addf %54, %55 : vector<128x128xf32>
    %cst_17 = arith.constant 0.000000e+00 : f32
    %57 = vector.broadcast %cst_17 : f32 to vector<128x128xf32>
    %58 = arith.cmpf ogt, %56, %57 : vector<128x128xf32>
    %cst_18 = arith.constant 2.000000e-01 : f32
    %59 = vector.broadcast %cst_18 : f32 to vector<128x128xf32>
    %60 = arith.mulf %59, %56 : vector<128x128xf32>
    %61 = arith.select %58, %56, %60 : vector<128x128xi1>, vector<128x128xf32>
    %cst_19 = arith.constant -1.000000e+30 : f32
    %62 = vector.broadcast %cst_19 : f32 to vector<128x128xf32>
    %63 = arith.select %15, %61, %62 : vector<128x128xi1>, vector<128x128xf32>
    %cst_20 = arith.constant dense<0xFF800000> : vector<128xf32>
    %64 = vector.multi_reduction <maximumf>, %63, %cst_20 [1] : vector<128x128xf32> to vector<128xf32>
    %65 = vector.shape_cast %64 : vector<128xf32> to vector<128x1xf32>
    %66 = vector.broadcast %65 : vector<128x1xf32> to vector<128x128xf32>
    %67 = arith.subf %63, %66 : vector<128x128xf32>
    %68 = math.exp %67 : vector<128x128xf32>
    %cst_21 = arith.constant dense<0.000000e+00> : vector<128xf32>
    %69 = vector.multi_reduction <add>, %68, %cst_21 [1] : vector<128x128xf32> to vector<128xf32>
    %70 = vector.shape_cast %69 : vector<128xf32> to vector<128x1xf32>
    %71 = vector.extract_strided_slice %3 {offsets = [0, 8], sizes = [128, 8], strides = [1, 1]} : vector<128x32xf32> to vector<128x8xf32>
    %72 = vector.extract_strided_slice %3 {offsets = [0, 24], sizes = [128, 8], strides = [1, 1]} : vector<128x32xf32> to vector<128x8xf32>
    %73 = arith.select %0, %71, %72 : vector<128x8xf32>
    %74 = arith.truncf %68 : vector<128x128xf32> to vector<128x128xbf16>
    %75 = arith.truncf %73 : vector<128x8xf32> to vector<128x8xbf16>
    %cst_22 = arith.constant dense<0.000000e+00> : vector<128x8xf32>
    %76 = tpu.matmul %74, %75, %cst_22 {dimension_numbers = #tpu.dot_dimension_numbers<[1], [0], [0], [1], [0, 0, 1, 1], [], []>} : vector<128x128xbf16>, vector<128x8xbf16>, vector<128x8xf32> -> vector<128x8xf32>
    %77 = tpu.reciprocal %70 {approx = true} : vector<128x1xf32> -> vector<128x1xf32>
    %78 = vector.broadcast %77 : vector<128x1xf32> to vector<128x8xf32>
    %79 = arith.mulf %76, %78 : vector<128x8xf32>
    %80 = tpu.concatenate %47, %79 in 1 : vector<128x8xf32>, vector<128x8xf32> -> vector<128x16xf32>
    %cst_23 = arith.constant 0.000000e+00 : f32
    %81 = vector.broadcast %cst_23 : f32 to vector<128x112xf32>
    %82 = tpu.concatenate %80, %81 in 1 : vector<128x16xf32>, vector<128x112xf32> -> vector<128x128xf32>
    %cst_24 = arith.constant 0.699999988 : f32
    %cst_25 = arith.constant 3.000000e-01 : f32
    %83 = arith.select %0, %cst_24, %cst_25 : f32
    %84 = vector.broadcast %83 : f32 to vector<128x128xf32>
    %85 = arith.mulf %84, %82 : vector<128x128xf32>
    %86 = arith.extui %0 : i1 to i32
    %c0_i32_26 = arith.constant 0 : i32
    %87 = arith.cmpi ne, %86, %c0_i32_26 : i32
    scf.if %87 {
      %c0_28 = arith.constant 0 : index
      %c0_29 = arith.constant 0 : index
      %91 = vector.load %arg9[%c0_28, %c0_29] : memref<128x128xf32, #tpu.memory_space<vmem>>, vector<128x128xf32>
      tpu.vector_store %arg9[%c0_28, %c0_29], %85 {strides = array<i32>} : memref<128x128xf32, #tpu.memory_space<vmem>>, vector<128x128xf32>,
    } else {
    }
    %c1_i32 = arith.constant 1 : i32
    %88 = arith.cmpi eq, %arg1, %c1_i32 : i32
    %89 = arith.extui %88 : i1 to i32
    %c0_i32_27 = arith.constant 0 : i32
    %90 = arith.cmpi ne, %89, %c0_i32_27 : i32
    scf.if %90 {
      %c0_28 = arith.constant 0 : index
      %c0_29 = arith.constant 0 : index
      %91 = vector.load %arg9[%c0_28, %c0_29] : memref<128x128xf32, #tpu.memory_space<vmem>>, vector<128x128xf32>
      %92 = arith.addf %91, %85 : vector<128x128xf32>
      %c0_30 = arith.constant 0 : index
      %c0_31 = arith.constant 0 : index
      %93 = vector.load %arg7[%c0_30, %c0_31] : memref<1x128xf32, #tpu.memory_space<vmem>>, vector<1x128xf32>
      %94 = vector.broadcast %93 : vector<1x128xf32> to vector<128x128xf32>
      %95 = arith.addf %92, %94 : vector<128x128xf32>
      %c0_32 = arith.constant 0 : index
      %c0_33 = arith.constant 0 : index
      %96 = vector.load %arg9[%c0_32, %c0_33] : memref<128x128xf32, #tpu.memory_space<vmem>>, vector<128x128xf32>
      tpu.vector_store %arg9[%c0_32, %c0_33], %95 {strides = array<i32>} : memref<128x128xf32, #tpu.memory_space<vmem>>, vector<128x128xf32>,
    } else {
    }
    return
  }
  func.func @transform_0(%arg0: i32, %arg1: i32) -> (i32, i32) {
    %c0_i32 = arith.constant 0 : i32
    %c0_i32_0 = arith.constant 0 : i32
    %c0_i32_1 = arith.constant 0 : i32
    return %c0_i32, %c0_i32_0 : i32, i32
  }
  func.func @transform_1(%arg0: i32, %arg1: i32) -> (i32, i32) {
    %c0_i32 = arith.constant 0 : i32
    %c0_i32_0 = arith.constant 0 : i32
    %c0_i32_1 = arith.constant 0 : i32
    return %c0_i32, %c0_i32_0 : i32, i32
  }
  func.func @transform_2(%arg0: i32, %arg1: i32) -> (i32, i32) {
    %c0_i32 = arith.constant 0 : i32
    %c0_i32_0 = arith.constant 0 : i32
    %c0_i32_1 = arith.constant 0 : i32
    return %c0_i32, %c0_i32_0 : i32, i32
  }
  func.func @transform_3(%arg0: i32, %arg1: i32) -> (i32, i32) {
    %c0_i32 = arith.constant 0 : i32
    %c0_i32_0 = arith.constant 0 : i32
    %c0_i32_1 = arith.constant 0 : i32
    return %c0_i32, %c0_i32_0 : i32, i32
  }
  func.func @transform_4(%arg0: i32, %arg1: i32) -> (i32, i32) {
    %c0_i32 = arith.constant 0 : i32
    %c0_i32_0 = arith.constant 0 : i32
    %c0_i32_1 = arith.constant 0 : i32
    return %c0_i32, %c0_i32_0 : i32, i32
  }
  func.func @transform_5(%arg0: i32, %arg1: i32) -> (i32, i32) {
    %c0_i32 = arith.constant 0 : i32
    %c0_i32_0 = arith.constant 0 : i32
    %c0_i32_1 = arith.constant 0 : i32
    return %c0_i32, %c0_i32_0 : i32, i32
  }
  func.func @transform_6(%arg0: i32, %arg1: i32) -> (i32, i32, i32) {
    %c0_i32 = arith.constant 0 : i32
    %c0_i32_0 = arith.constant 0 : i32
    return %arg1, %arg0, %c0_i32 : i32, i32, i32
  }
  func.func @transform_7(%arg0: i32, %arg1: i32) -> (i32, i32) {
    %c0_i32 = arith.constant 0 : i32
    %c0_i32_0 = arith.constant 0 : i32
    return %arg0, %c0_i32 : i32, i32
  }
}

</mosaic_0001>

<bundles_post_ra>
// kernel: tpu_custom_call.1
= control target key start
LH: loop header
LB: loop body
LE: loop exit
PB: predicated region body
PF: predicated region fallthrough
CT: control target
= control target key end

     0   :  { %s4457_s0 = inlined_call_operand.hbm [shape: f32[128,32], index: 0, kind: input, shape index: {}]   ;;  %s4458_s1 = inlined_call_operand.hbm [shape: f32[32,128], index: 1, kind: input, shape index: {}]   ;;  %s4459_s2 = inlined_call_operand.hbm [shape: f32[32,32], index: 2, kind: input, shape index: {}]   ;;  %s4460_s3 = inlined_call_operand.hbm [shape: f32[32,4], index: 3, kind: input, shape index: {}]   ;;  %s4461_s4 = inlined_call_operand.hbm [shape: f32[4,32], index: 4, kind: input, shape index: {}]   ;;  %s4462_s5 = inlined_call_operand.hbm [shape: f32[1,128], index: 5, kind: input, shape index: {}]   ;;  %s4463_s6 = inlined_call_operand.hbm [shape: s8[2,128,128], index: 6, kind: input, shape index: {}]   ;;  %s4464_s7 = inlined_call_operand.hbm [shape: f32[128,128], index: 7, kind: output, shape index: {}]  }
   0x1   :  { %4468 = sst [smem:[#allocation23_spill]] %s4457_s0 }
   0x2   :  { %4469 = sst [smem:[#allocation24_spill]] %s4464_s7 }
   0x3   :  { %12 = vsyncpa [#allocation5], 0 }
   0x4   :  { %13 = vsyncpa [#allocation8], 0 }
   0x5   :  { %14 = vsyncpa [#allocation11], 0 }
   0x6   :  { %15 = vsyncpa [#allocation14], 0 }
   0x7   :  { %16 = vsyncpa [#allocation6], 0  ;;  %s3322_s24 = smov 0   ;;  %s3324_s25 = smov 0  }
   0x8   :  { %s3326_s26 = smov 0   ;;  %s3328_s27 = smov 0  }
   0x9   :  { %s3330_s28 = smov 0   ;;  %s3332_s29 = smov 0  }
   0xa LB: > { %s3353_s30 = sadd.s32 4294967295, %s3260_s29   ;;  %p2335_p0 = scmp.ge.s32.totalorder %s3260_s29, 1  ;;  %s3260_s29 = sphi %s3332_s29, %s22_s29   ;;  %s3256_s28 = sphi %s3330_s28, %s4518_s28   ;;  %s3252_s27 = sphi %s3328_s27, %s4517_s27   ;;  %s3248_s26 = sphi %s3326_s26, %s4516_s26   ;;  %s3244_s25 = sphi %s3324_s25, %s4515_s25   ;;  %s3240_s24 = sphi %s3322_s24, %s4514_s24  }
   0xb   : > { %p4466_p1 = scmp.eq.s32.totalorder %s3353_s30, 0  ;;  %p219_p2 = scmp.lt.s32.totalorder %s3260_s29, 3 }
   0xc   : > { %s3262_s9 = smov [#allocation4]   ;;  %s3263_s12 = smov [#allocation7]  }
   0xd   : > { %p3358_p3 = pnand %p2335_p0, %p219_p2  ;;  %s231_s10 = sshll.u32 %s3262_s9, 4  ;;  %s3362_s10 = int_to_ptr.vmem [resolvable:$true] %s231_s10 }
   0xe   : > { %s244_s13 = sshll.u32 %s3263_s12, 4  ;;  %s3264_s14 = smov [#allocation10]   ;;  %s3372_s13 = int_to_ptr.vmem [resolvable:$true] %s244_s13 }
   0xf   : > { %s4470_s8 = scalar_select %p3358_p3, 1, 0 }
  0x10   : > { %p2668_p4 = pneg %p3358_p3  ;;  %s3374_s15 = sshll.u32 %s3264_s14, 4  ;;  %s271_s15 = int_to_ptr.vmem [resolvable:$true] %s3374_s15 }
  0x11   : > { %s4472_s0 = sld [smem:[#allocation23_spill]] }
  0x12   : > { %p3368_p5 = pnand %p2668_p4, %p4466_p1 }
  0x14   : > { %p3384_p7 = pneg %p3368_p5 }
  0x17   : > { %s2966_s18 = scalar_lea.hbm %s4472_s0, 2048 }
  0x18   : > { %p2967_p6 = scmp.ne.s32.totalorder %s4472_s0, %s2966_s18  ;;  %p2973_p10 = scmp.lt.u32.totalorder %s2966_s18, %s4472_s0 }
  0x1a   : > { %p2969_p8 = pnand %p3384_p7, %p2967_p6 }
  0x1c   : > { %p2970_p9 = pneg %p2969_p8 }
  0x1e   : > { %p2975_p11 = pnand %p2973_p10, %p2970_p9 }
  0x20   : > { %2978 = shalt.err (!%p2975_p11)
}
  0x21   : > { %s2979_s9 = scalar_lea.vmem %s3362_s10, 2048  ;;  %p2987_p2 = scmp.lt.s32.totalorder %s3362_s10, %s3362_s10 }
  0x22   : > { %p2980_p12 = scmp.ne.s32.totalorder %s3362_s10, %s2979_s9  ;;  %p2988_p4 = scmp.lt.s32.totalorder %s2979_s9, %s2979_s9 }
  0x24   : > { %p2982_p13 = pnand %p2980_p12, %p3384_p7  ;;  %p2989_p6 = por %p2988_p4, %p2987_p2 }
  0x26   : > { %p2983_p0 = pneg %p2982_p13 }
  0x28   : > { %p2990_p8 = pnand %p2989_p6, %p2983_p0 }
  0x2a   : > { %2993 = shalt.err (!%p2990_p8)
}
  0x2b   : > { %s3265_s12 = smov 128   ;;  %s3266_s14 = smov 8  }
  0x2c   : > { %2671 = dma.hbm_to_vmem [thread:$0]  (!%p3368_p5), %s4472_s0, 2048, %s3362_s10, [#allocation5], %s3265_s12, %s3265_s12, %s3266_s14  }
  0x2d   : > { %s2994_s20 = scalar_lea.hbm %s4458_s1, 512 }
  0x2e   : > { %p2995_p9 = scmp.ne.s32.totalorder %s4458_s1, %s2994_s20  ;;  %p3001_p12 = scmp.lt.u32.totalorder %s2994_s20, %s4458_s1 }
  0x30   : > { %p2997_p10 = pnand %p2995_p9, %p3384_p7 }
  0x32   : > { %p2998_p11 = pneg %p2997_p10 }
  0x34   : > { %p3003_p13 = pnand %p3001_p12, %p2998_p11 }
  0x36   : > { %3006 = shalt.err (!%p3003_p13)
}
  0x37   : > { %s3007_s10 = scalar_lea.vmem %s3372_s13, 512  ;;  %p3015_p6 = scmp.lt.s32.totalorder %s3372_s13, %s3372_s13 }
  0x38   : > { %p3008_p0 = scmp.ne.s32.totalorder %s3372_s13, %s3007_s10  ;;  %p3016_p8 = scmp.lt.s32.totalorder %s3007_s10, %s3007_s10 }
  0x3a   : > { %p3010_p2 = pnand %p3008_p0, %p3384_p7  ;;  %p3017_p9 = por %p3016_p8, %p3015_p6 }
  0x3c   : > { %p3011_p4 = pneg %p3010_p2 }
  0x3e   : > { %p3018_p10 = pnand %p3017_p9, %p3011_p4 }
  0x40   : > { %3021 = shalt.err (!%p3018_p10)
}
  0x41   : > { %2674 = dma.hbm_to_vmem [thread:$0]  (!%p3368_p5), %s4458_s1, 512, %s3372_s13, [#allocation8], %s3265_s12, %s3265_s12, %s3266_s14  }
  0x42   : > { %s3022_s19 = scalar_lea.hbm %s4460_s3, 512 }
  0x43   : > { %p3023_p11 = scmp.ne.s32.totalorder %s4460_s3, %s3022_s19  ;;  %p3029_p0 = scmp.lt.u32.totalorder %s3022_s19, %s4460_s3 }
  0x45   : > { %p3025_p12 = pnand %p3023_p11, %p3384_p7 }
  0x47   : > { %p3026_p13 = pneg %p3025_p12 }
  0x49   : > { %p3031_p2 = pnand %p3029_p0, %p3026_p13 }
  0x4b   : > { %3034 = shalt.err (!%p3031_p2)
}
  0x4c   : > { %s3035_s10 = scalar_lea.vmem %s271_s15, 512  ;;  %p3043_p9 = scmp.lt.s32.totalorder %s271_s15, %s271_s15 }
  0x4d   : > { %p3036_p4 = scmp.ne.s32.totalorder %s271_s15, %s3035_s10  ;;  %p3044_p10 = scmp.lt.s32.totalorder %s3035_s10, %s3035_s10 }
  0x4f   : > { %p3038_p6 = pnand %p3036_p4, %p3384_p7  ;;  %p3045_p1 = por %p3044_p10, %p3043_p9 }
  0x51   : > { %p3039_p8 = pneg %p3038_p6 }
  0x53   : > { %p3046_p3 = pnand %p3045_p1, %p3039_p8 }
  0x55   : > { %3049 = shalt.err (!%p3046_p3)
}
  0x56   : > { %2680 = dma.hbm_to_vmem [thread:$0]  (!%p3368_p5), %s4460_s3, 512, %s271_s15, [#allocation11], %s3265_s12, %s3265_s12, %s3266_s14  }
  0x57   : > { %s3267_s16 = smov [#allocation9]   ;;  %s3268_s18 = smov [#allocation12]  }
  0x58   : > { %s257_s17 = sshll.u32 %s3267_s16, 4  ;;  %s284_s19 = sshll.u32 %s3268_s18, 4  ;;  %s258_s17 = int_to_ptr.vmem [resolvable:$true] %s257_s17  ;;  %s285_s19 = int_to_ptr.vmem [resolvable:$true] %s284_s19 }
  0x59   : > { %s3050_s23 = scalar_lea.hbm %s4459_s2, 512 }
  0x5a   : > { %p3051_p1 = scmp.ne.s32.totalorder %s4459_s2, %s3050_s23  ;;  %p3057_p12 = scmp.lt.u32.totalorder %s3050_s23, %s4459_s2 }
  0x5c   : > { %p3053_p3 = pnand %p3051_p1, %p3384_p7 }
  0x5e   : > { %p3054_p11 = pneg %p3053_p3 }
  0x60   : > { %p3059_p13 = pnand %p3057_p12, %p3054_p11 }
  0x62   : > { %3062 = shalt.err (!%p3059_p13)
}
  0x63   : > { %s3063_s15 = scalar_lea.vmem %s258_s17, 512  ;;  %p3071_p6 = scmp.lt.s32.totalorder %s258_s17, %s258_s17 }
  0x64   : > { %p3064_p0 = scmp.ne.s32.totalorder %s258_s17, %s3063_s15  ;;  %p3072_p8 = scmp.lt.s32.totalorder %s3063_s15, %s3063_s15 }
  0x66   : > { %p3066_p2 = pnand %p3064_p0, %p3384_p7  ;;  %p3073_p9 = por %p3072_p8, %p3071_p6 }
  0x68   : > { %p3067_p4 = pneg %p3066_p2 }
  0x6a   : > { %p3074_p10 = pnand %p3073_p9, %p3067_p4 }
  0x6c   : > { %3077 = shalt.err (!%p3074_p10)
}
  0x6d   : > { %2677 = dma.hbm_to_vmem [thread:$0]  (!%p3368_p5), %s4459_s2, 512, %s258_s17, [#allocation8], %s3265_s12, %s3265_s12, %s3266_s14  }
  0x6e   : > { %s3078_s20 = scalar_lea.hbm %s4461_s4, 64 }
  0x6f   : > { %p3079_p1 = scmp.ne.s32.totalorder %s4461_s4, %s3078_s20  ;;  %p3085_p12 = scmp.lt.u32.totalorder %s3078_s20, %s4461_s4 }
  0x71   : > { %p3081_p3 = pnand %p3079_p1, %p3384_p7 }
  0x73   : > { %p3082_p11 = pneg %p3081_p3 }
  0x75   : > { %p3087_p13 = pnand %p3085_p12, %p3082_p11 }
  0x77   : > { %3090 = shalt.err (!%p3087_p13)
}
  0x78   : > { %s3091_s13 = scalar_lea.vmem %s285_s19, 64  ;;  %p3099_p6 = scmp.lt.s32.totalorder %s285_s19, %s285_s19 }
  0x79   : > { %p3092_p0 = scmp.ne.s32.totalorder %s285_s19, %s3091_s13  ;;  %p3100_p8 = scmp.lt.s32.totalorder %s3091_s13, %s3091_s13 }
  0x7b   : > { %p3094_p2 = pnand %p3092_p0, %p3384_p7  ;;  %p3101_p9 = por %p3100_p8, %p3099_p6 }
  0x7d   : > { %p3095_p4 = pneg %p3094_p2 }
  0x7f   : > { %p3102_p10 = pnand %p3101_p9, %p3095_p4 }
  0x81   : > { %3105 = shalt.err (!%p3102_p10)
}
  0x82   : > { %2683 = dma.hbm_to_vmem [thread:$0]  (!%p3368_p5), %s4461_s4, 64, %s285_s19, [#allocation11]  }
  0x83   : > { %s3269_s0 = smov [#allocation13]   ;;  %s3106_s20 = scalar_lea.hbm %s4462_s5, 16 }
  0x84   : > { %s295_s7 = sshll.u32 %s3269_s0, 4  ;;  %p3107_p1 = scmp.ne.s32.totalorder %s4462_s5, %s3106_s20  ;;  %s296_s7 = int_to_ptr.vmem [resolvable:$true] %s295_s7 }
  0x85   : > { %p3113_p12 = scmp.lt.u32.totalorder %s3106_s20, %s4462_s5 }
  0x86   : > { %p3109_p3 = pnand %p3107_p1, %p3384_p7 }
  0x88   : > { %p3110_p11 = pneg %p3109_p3 }
  0x8a   : > { %p3115_p13 = pnand %p3113_p12, %p3110_p11 }
  0x8c   : > { %3118 = shalt.err (!%p3115_p13)
}
  0x8d   : > { %s3119_s19 = scalar_lea.vmem %s296_s7, 16  ;;  %s3126_s13 = scalar_lea.vmem %s296_s7, 32 }
  0x8e   : > { %p3120_p0 = scmp.ne.s32.totalorder %s296_s7, %s3119_s19  ;;  %p3127_p6 = scmp.lt.s32.totalorder %s296_s7, %s296_s7 }
  0x8f   : > { %p3128_p8 = scmp.lt.s32.totalorder %s3126_s13, %s3119_s19 }
  0x90   : > { %p3122_p2 = pnand %p3120_p0, %p3384_p7 }
  0x91   : > { %p3129_p9 = por %p3128_p8, %p3127_p6 }
  0x92   : > { %p3123_p4 = pneg %p3122_p2 }
  0x94   : > { %p3130_p10 = pnand %p3129_p9, %p3123_p4 }
  0x96   : > { %3133 = shalt.err (!%p3130_p10)
}
  0x97   : > { %2686 = dma.hbm_to_vmem [thread:$0]  (!%p3368_p5), %s4462_s5, 16, %s296_s7, [#allocation14]  }
  0x98   : > { %s31_s21 = sadd.s32 1, %s3256_s28  ;;  %s169_s11 = sadd.s32 1, %s3248_s26 }
  0x99   : > { %p32_p7 = scmp.ge.s32.totalorder %s31_s21, 2  ;;  %p176_p1 = scmp.ne.s32.totalorder %s3248_s26, %s3244_s25 }
  0x9a   : > { %p177_p3 = scmp.eq.s32.totalorder %s3260_s29, 0  ;;  %p182_p11 = scmp.ne.s32.totalorder %s3244_s25, %s3240_s24 }
  0x9b   : > { %s4520_s21 = smov (%p32_p7, %s31_s21), 0  ;;  %p4475_p13 = scmp.eq.s32.totalorder %s3353_s30, 0 }
  0x9c   : > { %p3522_p12 = por %p177_p3, %p176_p1  ;;  %s164_s7 = ssub.s32 %s3256_s28, %s4520_s21 }
  0x9d   : > { %p3528_p0 = por %p4475_p13, %p182_p11  ;;  %p2697_p5 = scmp.lt.s32.totalorder %s3260_s29, 2 }
  0x9e   : > { %p167_p2 = scmp.eq.s32.totalorder %s164_s7, 0  ;;  %s306_s18 = sand.u32 1, %s3260_s29  }
  0x9f   : > { %s308_s20 = sand.u32 1, %s3248_s26   ;;  %s2395_s23 = sshll.u32 %s3256_s28, 9 }
  0xa0   : > { %s3538_s22 = scalar_select %p167_p2, %s3248_s26, %s169_s11  }
  0xa1   : > { %s2343_s24 = sshll.u32 %s308_s20, 5  ;;  %s3544_s19 = scalar_lea.hbm %s4463_s6, %s2395_s23 }
  0xa2   : > { %s310_s13 = scalar_lea.vmem [#allocation15], %s2343_s24  ;;  %p3548_p4 = pnand %p2697_p5, %p3522_p12 }
  0xa3   : > { %s319_s17 = sshll.u32 %s310_s13, 4  ;;  %s3554_s11 = scalar_lea.sflag [#allocation5], %s306_s18  ;;  %s3552_s17 = int_to_ptr.vmem [resolvable:$true] %s319_s17 }
  0xa4   : > { %s3134_s7 = scalar_lea.hbm %s3544_s19, 512  ;;  %p3136_p8 = pneg %p3548_p4 }
  0xa5   : > { %p3135_p6 = scmp.ne.s32.totalorder %s3544_s19, %s3134_s7  ;;  %s3139_s24 = scalar_lea.hbm %s4463_s6, 1024 }
  0xa6   : > { %p3140_p7 = scmp.lt.u32.totalorder %s3544_s19, %s4463_s6  ;;  %p3141_p1 = scmp.lt.u32.totalorder %s3139_s24, %s3134_s7 }
  0xa7   : > { %p3137_p9 = pnand %p3136_p8, %p3135_p6  ;;  %p3143_p11 = scmp.lt.u32.totalorder %s3134_s7, %s3544_s19 }
  0xa8   : > { %p3142_p3 = por %p3141_p1, %p3140_p7 }
  0xa9   : > { %p3138_p10 = pneg %p3137_p9 }
  0xaa   : > { %p3144_p12 = por %p3143_p11, %p3142_p3 }
  0xac   : > { %p3145_p13 = pnand %p3144_p12, %p3138_p10 }
  0xae   : > { %3148 = shalt.err (!%p3145_p13)
}
  0xaf   : > { %s3149_s18 = scalar_lea.vmem %s3552_s17, 512  ;;  %s3270_s10 = smov [#allocation15]  }
  0xb0   : > { %p3150_p5 = scmp.ne.s32.totalorder %s3552_s17, %s3149_s18  ;;  %s3154_s13 = sshll.u32 %s3270_s10, 4  ;;  %s3155_s13 = int_to_ptr.vmem [resolvable:$false] %s3154_s13 }
  0xb1   : > { %s3156_s20 = scalar_lea.vmem %s3155_s13, 1024  ;;  %p3157_p9 = scmp.lt.s32.totalorder %s3552_s17, %s3155_s13 }
  0xb2   : > { %p3152_p2 = pnand %p3150_p5, %p3136_p8  ;;  %p3158_p7 = scmp.lt.s32.totalorder %s3156_s20, %s3149_s18 }
  0xb4   : > { %p3153_p6 = pneg %p3152_p2  ;;  %p3159_p1 = por %p3158_p7, %p3157_p9 }
  0xb6   : > { %p3160_p3 = pnand %p3159_p1, %p3153_p6 }
  0xb8   : > { %3163 = shalt.err (!%p3160_p3)
}
  0xb9   : > { %2690 = dma.hbm_to_vmem [thread:$0]  (!%p3548_p4), %s3544_s19, 512, %s3552_s17, %s3554_s11, %s3265_s12, %s3265_s12, %s3266_s14  }
  0xba   : > { %p4478_p8 = scmp.ne.s32.totalorder %s4470_s8, 0 }
  0xbb   : > { %p4479_p10 = scmp.eq.s32.totalorder (!%p4478_p8), %s3353_s30, 0 }
  0xbc   : > { %331 = sbr.rel (%p4478_p8) target bundleno = 1559 (0x617), region = 48 }
  0xc3   : > { %3215 = dma.done.wait (%p4479_p10), [#allocation5], 2048   ;;  %p4480_p11 = pmov %p4479_p10 }
  0xc4   : > { %p4481_p12 = pmov %p4479_p10 }
  0xc5   : > { %3217 = vsyncadd (%p4480_p11), [#allocation5], 4294965248 }
  0xc6   : > { %3219 = dma.done.wait (%p4481_p12), [#allocation8], 1024   ;;  %p4482_p13 = pmov %p4479_p10 }
  0xc7   : > { %p4483_p5 = pmov %p4479_p10 }
  0xc8   : > { %3221 = vsyncadd (%p4482_p13), [#allocation8], 4294966272 }
  0xc9   : > { %3223 = dma.done.wait (%p4483_p5), [#allocation11], 576   ;;  %p4484_p4 = pmov %p4483_p5 }
  0xcb   : > { %3225 = vsyncadd (%p4484_p4), [#allocation11], 4294966720  ;;  %p4485_p2 = pmov %p4484_p4 }
  0xcd   : > { %3227 = dma.done.wait (%p4485_p2), [#allocation14], 16   ;;  %p4486_p6 = pmov %p4485_p2 }
  0xce   : > { %s357_s8 = sand.u32 1, %s3353_s30   ;;  %s359_s12 = sand.u32 1, %s3244_s25  }
  0xcf   : > { %3229 = vsyncadd (%p4486_p6), [#allocation14], 4294967280  ;;  %s2353_s14 = sshll.u32 %s359_s12, 5  ;;  %s358_s19 = scalar_lea.sflag [#allocation5], %s357_s8 }
  0xd0   : > { %s3605_s17 = scalar_lea.vmem [#allocation15], %s2353_s14 }
  0xd1   : > { %3231 = dma.done.wait (%p3528_p0), %s358_s19, 512  }
  0xd2   : > { %3233 = vsyncadd (%p3528_p0), %s358_s19, 4294966784  ;;  %p390_p9 = scmp.eq.s32.totalorder %s3252_s27, 0  ;;  %p2354_p7 = scmp.ne.s32.totalorder %s3252_s27, 0 }
  0xd3   : > { %v410_v0 = vld [vmem:[#allocation9] sm:$0xff] (!%p2354_p7)  ;;  %v411_v1 = vld [vmem:[#allocation9 + $0x8] sm:$0xff] (!%p2354_p7)  ;;  %v412_v2 = vld [vmem:[#allocation9 + $0x10] sm:$0xff] (!%p2354_p7)  ;;  %vm414_vm0 = vcmask (!%p2354_p7), 261120   ;;  %v3271_v14 = vmov (!%p2354_p7), 0.0|0.0   ;;  %vm3272_vm1 = vmmov (!%p2354_p7), 0  }
  0xd4   : > { %393 = sbr.rel (%p2354_p7) target bundleno = 452 (0x1c4), region = 80  ;;  %v2612_v3 = vpack.c.bf16 (!%p2354_p7), %v411_v1, %v410_v0  ;;  %v413_v4 = vld [vmem:[#allocation9 + $0x18] sm:$0xff] (!%p2354_p7)  ;;  %v394_v5 = vld [vmem:[#allocation4] sm:$0xff] (!%p2354_p7)  ;;  %v404_v7 = vld [vmem:[#allocation4 + $0x50] sm:$0xff] (!%p2354_p7)  ;;  %v3273_v27 = vmov (!%p2354_p7), 0.0  }
  0xd5   : > { %v2616_v6 = vpack.c.bf16 (!%p2354_p7), %v413_v4, %v412_v2  ;;  %2481 = vmatprep.mubr.msk.f32.mxu0 (!%p2354_p7), %vm414_vm0, %v394_v5  ;;  %v625_v8 = vld [vmem:[#allocation7] sm:$0xff] (!%p2354_p7)  ;;  %v626_v9 = vld [vmem:[#allocation7 + $0x8] sm:$0xff] (!%p2354_p7)  ;;  %2496 = vmatprep.mubr.msk.f32.mxu1 (!%p2354_p7), %vm414_vm0, %v404_v7  ;;  %v405_v11 = vld [vmem:[#allocation4 + $0x58] sm:$0xff] (!%p2354_p7) }
  0xd6   : > { %2613 = vmatprep.subr.bf16.mxu0 (!%p2354_p7), %v2612_v3  ;;  %2634 = vmatprep.subr.bf16.mxu1 (!%p2354_p7), %v2612_v3  ;;  %v395_v10 = vld [vmem:[#allocation4 + $0x8] sm:$0xff] (!%p2354_p7)  ;;  %v2621_v12 = vpack.c.bf16 (!%p2354_p7), %v626_v9, %v625_v8  ;;  %v396_v13 = vld [vmem:[#allocation4 + $0x10] sm:$0xff] (!%p2354_p7)  ;;  %v406_v15 = vld [vmem:[#allocation4 + $0x60] sm:$0xff] (!%p2354_p7) }
  0xd7   : > { %2615 = vmatpush3.bf16.msra.mxu0 (!%p2354_p7), %v2612_v3  ;;  %2636 = vmatpush3.bf16.msra.mxu1 (!%p2354_p7), %v2612_v3  ;;  %v627_v16 = vld [vmem:[#allocation7 + $0x10] sm:$0xff] (!%p2354_p7)  ;;  %v628_v17 = vld [vmem:[#allocation7 + $0x18] sm:$0xff] (!%p2354_p7)  ;;  %v407_v19 = vld [vmem:[#allocation4 + $0x68] sm:$0xff] (!%p2354_p7) }
  0xd8   : > { %2617 = vmatprep.subr.bf16.mxu0 (!%p2354_p7), %v2616_v6  ;;  %2635 = vmatprep.subr.bf16.mxu1 (!%p2354_p7), %v2616_v6  ;;  %v397_v18 = vld [vmem:[#allocation4 + $0x18] sm:$0xff] (!%p2354_p7)  ;;  %v398_v20 = vld [vmem:[#allocation4 + $0x20] sm:$0xff] (!%p2354_p7)  ;;  %v408_v21 = vld [vmem:[#allocation4 + $0x70] sm:$0xff] (!%p2354_p7)  ;;  %v2624_v22 = vpack.c.bf16 (!%p2354_p7), %v628_v17, %v627_v16 }
  0xd9   : > { %v399_v23 = vld [vmem:[#allocation4 + $0x28] sm:$0xff] (!%p2354_p7)  ;;  %v409_v24 = vld [vmem:[#allocation4 + $0x78] sm:$0xff] (!%p2354_p7)  ;;  %v400_v25 = vld [vmem:[#allocation4 + $0x30] sm:$0xff] (!%p2354_p7) }
  0xda   : > { %v401_v26 = vld [vmem:[#allocation4 + $0x38] sm:$0xff] (!%p2354_p7)  ;;  %v624_v28 = vld [vmem:[#allocation12] sm:$0xf] (!%p2354_p7)  ;;  %v403_v30 = vld [vmem:[#allocation4 + $0x48] sm:$0xff] (!%p2354_p7) }
  0xdb   : > { %2619 = vmatpush3.bf16.msra.mxu0 %v2616_v6  ;;  %2637 = vmatpush3.bf16.msra.mxu1 %v2616_v6  ;;  %v402_v29 = vld [vmem:[#allocation4 + $0x40] sm:$0xff] }
  0xdc   : > { %2620 = vmatprep.subr.bf16.mxu1 %v3271_v14 }
  0xde   : > { %2482 = vmatmul.mubr.msk.f32.vlgmr.msra.gmra.mrb[0].mxu0 %vm414_vm0, %v395_v10  ;;  %2497 = vmatmul.mubr.msk.f32.vlgmr.msra.gmra.mrb[0].mxu1 %vm414_vm0, %v405_v11 }
  0xdf   : > { %2484 = vmatprep.mubr.msk.f32.mxu0 %vm414_vm0, %v396_v13  ;;  %2622 = vmatpush3.bf16.msra.mxu1 %v2621_v12 }
  0xe0   : > { %2499 = vmatprep.mubr.msk.f32.mxu1 %vm414_vm0, %v406_v15  ;;  %2623 = vmatprep.subr.bf16.mxu1 %v3271_v14 }
  0xe2   : > { %2485 = vmatmul.mubr.msk.f32.gmra.mrb[2].mxu0 %vm414_vm0, %v397_v18  ;;  %2500 = vmatmul.mubr.msk.f32.gmra.mrb[2].mxu1 %vm414_vm0, %v407_v19 }
  0xe3   : > { %2487 = vmatprep.mubr.msk.f32.mxu0 %vm414_vm0, %v398_v20  ;;  %2502 = vmatprep.mubr.msk.f32.mxu1 %vm414_vm0, %v408_v21 }
  0xe4   : > { %2625 = vmatpush3.bf16.msra.mxu1 %v2624_v22 }
  0xe6   : > { %2488 = vmatmul.mubr.msk.f32.gmra.mrb[4].mxu0 %vm414_vm0, %v399_v23  ;;  %2503 = vmatmul.mubr.msk.f32.gmra.mrb[4].mxu1 %vm414_vm0, %v409_v24 }
  0xe7   : > { %2490 = vmatprep.mubr.msk.f32.mxu0 %vm414_vm0, %v400_v25  ;;  %2513 = vmatprep.mubr.msk.f32.mxu1 %vm3272_vm1, %v3273_v27 }
  0xea   : > { %2491 = vmatmul.mubr.msk.f32.gmra.mrb[6].mxu0 %vm414_vm0, %v401_v26  ;;  %2514 = vmatmul.mubr.msk.f32.vlgmr.msra.gmra.mrb[6].mxu1 %vm414_vm0, %v624_v28 }
  0xeb   : > { %2493 = vmatprep.mubr.msk.f32.mxu0 %vm414_vm0, %v402_v29 }
  0xee   : > { %2494 = vmatmul.mubr.msk.f32.gmra.mrb[8].mxu0 %vm414_vm0, %v403_v30 }
 0x1b1   : > { %v2483_v31 = vpop.f32.mrb[0].mxu0  ;;  %v2498_v32 = vpop.f32.mrb[0].mxu1 }
 0x1b2   : > { %609 = vst.msk [vmem:[#allocation2 + $0x8] sm:$0xff] %vm414_vm0, %v2483_v31  ;;  %v529_v33 = vpop.f32.mrb[1].mxu0  ;;  %619 = vst.msk [vmem:[#allocation2 + $0x58] sm:$0xff] %vm414_vm0, %v2498_v32  ;;  %v579_v34 = vpop.f32.mrb[1].mxu1 }
 0x1b3   : > { %608 = vst.msk [vmem:[#allocation2] sm:$0xff] %vm414_vm0, %v529_v33  ;;  %618 = vst.msk [vmem:[#allocation2 + $0x50] sm:$0xff] %vm414_vm0, %v579_v34 }
 0x1b5   : > { %v2486_v35 = vpop.f32.mrb[2].mxu0  ;;  %v2501_v36 = vpop.f32.mrb[2].mxu1 }
 0x1b6   : > { %611 = vst.msk [vmem:[#allocation2 + $0x18] sm:$0xff] %vm414_vm0, %v2486_v35  ;;  %v539_v37 = vpop.f32.mrb[3].mxu0  ;;  %621 = vst.msk [vmem:[#allocation2 + $0x68] sm:$0xff] %vm414_vm0, %v2501_v36  ;;  %v589_v38 = vpop.f32.mrb[3].mxu1 }
 0x1b7   : > { %610 = vst.msk [vmem:[#allocation2 + $0x10] sm:$0xff] %vm414_vm0, %v539_v37  ;;  %620 = vst.msk [vmem:[#allocation2 + $0x60] sm:$0xff] %vm414_vm0, %v589_v38 }
 0x1b9   : > { %v2489_v39 = vpop.f32.mrb[4].mxu0  ;;  %v2504_v40 = vpop.f32.mrb[4].mxu1 }
 0x1ba   : > { %613 = vst.msk [vmem:[#allocation2 + $0x28] sm:$0xff] %vm414_vm0, %v2489_v39  ;;  %v549_v41 = vpop.f32.mrb[5].mxu0  ;;  %623 = vst.msk [vmem:[#allocation2 + $0x78] sm:$0xff] %vm414_vm0, %v2504_v40  ;;  %v599_v42 = vpop.f32.mrb[5].mxu1 }
 0x1bb   : > { %612 = vst.msk [vmem:[#allocation2 + $0x20] sm:$0xff] %vm414_vm0, %v549_v41  ;;  %622 = vst.msk [vmem:[#allocation2 + $0x70] sm:$0xff] %vm414_vm0, %v599_v42 }
 0x1bd   : > { %v2492_v43 = vpop.f32.mrb[6].mxu0  ;;  %v698_v44 = vpop.f32.mrb[6].mxu1 }
 0x1be   : > { %615 = vst.msk [vmem:[#allocation2 + $0x38] sm:$0xff] %vm414_vm0, %v2492_v43  ;;  %v559_v45 = vpop.f32.mrb[7].mxu0  ;;  %702 = vst [vmem:[#allocation3] sm:$0xf] %v698_v44  ;;  %v2515_v46 = vpop.f32.mrb[7].mxu1 }
 0x1bf   : > { %614 = vst.msk [vmem:[#allocation2 + $0x30] sm:$0xff] %vm414_vm0, %v559_v45 }
 0x1c1   : > { %v2495_v47 = vpop.f32.mrb[8].mxu0 }
 0x1c2   : > { %617 = vst.msk [vmem:[#allocation2 + $0x48] sm:$0xff] %vm414_vm0, %v2495_v47  ;;  %v569_v48 = vpop.f32.mrb[9].mxu0 }
 0x1c3   : > { %616 = vst.msk [vmem:[#allocation2 + $0x40] sm:$0xff] %vm414_vm0, %v569_v48 }
 0x1c4 PF: > { %v738_v49 = vld [vmem:[#allocation10] sm:$0xff]  ;;  %v739_v50 = vld [vmem:[#allocation10 + $0x8] sm:$0xff]  ;;  %v740_v51 = vld [vmem:[#allocation10 + $0x10] sm:$0xff]  ;;  %vm742_vm2 = vcmask 261120   ;;  %s3274_s16 = smov 112   ;;  %s3275_s11 = smov 120  }
 0x1c5   : > { %v2626_v52 = vpack.c.bf16 %v739_v50, %v738_v49  ;;  %v741_v53 = vld [vmem:[#allocation10 + $0x18] sm:$0xff]  ;;  %v3650_v55 = vld [vmem:[#allocation2 + $0x8] sm:$0xff]  ;;  %v3654_v57 = vld [vmem:[#allocation2 + $0x10] sm:$0xff]  ;;  %s972_s15 = scalar_select %p390_p9, 1, 0 }
 0x1c6   : > { %v3648_v54 = vld [vmem:[#allocation2] sm:$0xff]  ;;  %v2630_v56 = vpack.c.bf16 %v741_v53, %v740_v51  ;;  %v3656_v58 = vld [vmem:[#allocation2 + $0x18] sm:$0xff]  ;;  %v3662_v61 = vld [vmem:[#allocation2 + $0x28] sm:$0xff]  ;;  %s3278_s7 = smov 126   ;;  %s3279_s0 = smov 8  }
 0x1c7   : > { %2524 = vmatprep.mubr.msk.f32.mxu0 %vm742_vm2, %v3648_v54  ;;  %v2773_v59 = vpack.i.bf16 %v3650_v55, %v3648_v54  ;;  %2627 = vmatprep.subr.bf16.mxu0 %v2626_v52  ;;  %v3660_v60 = vld [vmem:[#allocation2 + $0x20] sm:$0xff]  ;;  %v2778_v62 = vpack.i.bf16 %v3656_v58, %v3654_v57  ;;  %v3666_v63 = vld [vmem:[#allocation2 + $0x30] sm:$0xff]  ;;  %v3668_v0 = vld [vmem:[#allocation2 + $0x38] sm:$0xff]  ;;  %v973_v15 = vstv %s972_s15 }
 0x1c8   : > { %2629 = vmatpush3.bf16.msra.mxu0 %v2626_v52  ;;  %v2783_v1 = vpack.i.bf16 %v3662_v61, %v3660_v60  ;;  %v2788_v2 = vpack.i.bf16 %v3668_v0, %v3666_v63  ;;  %v3678_v5 = vld [vmem:[#allocation2 + $0x50] sm:$0xff]  ;;  %v3680_v6 = vld [vmem:[#allocation2 + $0x58] sm:$0xff]  ;;  %v3688_v9 = vld [vmem:[#allocation2 + $0x60] sm:$0xff]  ;;  %vm3730_vm3 = vcmp.eq.s32.totalorder %v973_v15, 1 }
 0x1c9   : > { %2774 = vrot.lane.b32.xlu1 %v2773_v59, %s3274_s16  ;;  %2631 = vmatprep.subr.bf16.mxu0 %v2630_v56  ;;  %v3676_v4 = vld [vmem:[#allocation2 + $0x48] sm:$0xff]  ;;  %v2798_v8 = vpack.i.bf16 %v3680_v6, %v3678_v5  ;;  %v3694_v11 = vld [vmem:[#allocation2 + $0x70] sm:$0xff]  ;;  %v3696_v12 = vld [vmem:[#allocation2 + $0x78] sm:$0xff] }
 0x1ca   : > { %2779 = vrot.lane.b32.xlu0 %v2778_v62, %s3274_s16  ;;  %v3674_v3 = vld [vmem:[#allocation2 + $0x40] sm:$0xff]  ;;  %v3690_v10 = vld [vmem:[#allocation2 + $0x68] sm:$0xff]  ;;  %v2808_v14 = vpack.i.bf16 %v3696_v12, %v3694_v11  ;;  %s2087_s24 = scalar_select %p390_p9, 0.7, 0.3 }
 0x1cb   : > { %v2793_v7 = vpack.i.bf16 %v3676_v4, %v3674_v3  ;;  %v2803_v13 = vpack.i.bf16 %v3690_v10, %v3688_v9 }
 0x1cc   : > { %2633 = vmatpush3.bf16.msra.mxu0 %v2630_v56 }
 0x1cd   : > { %2784 = vrot.lane.b32.xlu1 %v2783_v1, %s3274_s16  ;;  %v3276_v1 = vmov 1  }
 0x1ce   : > { %2789 = vrot.lane.b32.xlu0 %v2788_v2, %s3274_s16  ;;  %2813 = vset.pattern.permute.xlu1 %v3276_v1  ;;  %v3277_v2 = vmov 0  }
 0x1cf   : > { %2525 = vmatmul.mubr.msk.f32.vlgmr.msra.gmra.mrb[0].mxu0 %vm742_vm2, %v3650_v55  ;;  %2814 = vset.pattern.permute.xlu0 %v3277_v2 }
 0x1d0   : > { %2527 = vmatprep.mubr.msk.f32.mxu0 %vm742_vm2, %v3654_v57 }
 0x1d1   : > { %2794 = vrot.lane.b32.xlu1 %v2793_v7, %s3274_s16 }
 0x1d2   : > { %2799 = vrot.lane.b32.xlu0 %v2798_v8, %s3274_s16 }
 0x1d3   : > { %2528 = vmatmul.mubr.msk.f32.gmra.mrb[2].mxu0 %vm742_vm2, %v3656_v58 }
 0x1d4   : > { %2530 = vmatprep.mubr.msk.f32.mxu0 %vm742_vm2, %v3660_v60 }
 0x1d5   : > { %2804 = vrot.lane.b32.xlu1 %v2803_v13, %s3274_s16 }
 0x1d6   : > { %2809 = vrot.lane.b32.xlu0 %v2808_v14, %s3274_s16 }
 0x1d7   : > { %2531 = vmatmul.mubr.msk.f32.gmra.mrb[4].mxu0 %vm742_vm2, %v3662_v61 }
 0x1d8   : > { %2533 = vmatprep.mubr.msk.f32.mxu0 %vm742_vm2, %v3666_v63 }
 0x1db   : > { %2534 = vmatmul.mubr.msk.f32.gmra.mrb[6].mxu0 %vm742_vm2, %v3668_v0 }
 0x1dc   : > { %2536 = vmatprep.mubr.msk.f32.mxu0 %vm742_vm2, %v3674_v3 }
 0x1df   : > { %2537 = vmatmul.mubr.msk.f32.gmra.mrb[8].mxu0 %vm742_vm2, %v3676_v4 }
 0x1e0   : > { %2539 = vmatprep.mubr.msk.f32.mxu0 %vm742_vm2, %v3678_v5 }
 0x1e3   : > { %2540 = vmatmul.mubr.msk.f32.gmra.mrb[10].mxu0 %vm742_vm2, %v3680_v6 }
 0x1e4   : > { %2542 = vmatprep.mubr.msk.f32.mxu0 %vm742_vm2, %v3688_v9 }
 0x1e7   : > { %2543 = vmatmul.mubr.msk.f32.gmra.mrb[12].mxu0 %vm742_vm2, %v3690_v10 }
 0x1e8   : > { %2545 = vmatprep.mubr.msk.f32.mxu0 %vm742_vm2, %v3694_v11 }
 0x1eb   : > { %2546 = vmatmul.mubr.msk.f32.gmra.mrb[14].mxu0 %vm742_vm2, %v3696_v12 }
 0x23b   : > { %v2775_v16 = vpop.permute.xlu1 %2774 }
 0x23c   : > { %v2777_v18 = vunpack.i.h.bf16 %v2775_v16  ;;  %v2776_v19 = vunpack.i.l.bf16 %v2775_v16  ;;  %v2780_v20 = vpop.permute.xlu0 %2779 }
 0x23d   : > { %v2782_v21 = vunpack.i.h.bf16 %v2780_v20  ;;  %v2781_v22 = vunpack.i.l.bf16 %v2780_v20 }
 0x23e   : > { %v1399_v23 = vsel %vm3730_vm3, %v3648_v54, %v2776_v19  ;;  %v1400_v24 = vsel %vm3730_vm3, %v3650_v55, %v2777_v18 }
 0x23f   : > { %v1423_v25 = vpack.c.bf16 %v1400_v24, %v1399_v23  ;;  %v2785_v26 = vpop.permute.xlu1 %2784  ;;  %v1401_v27 = vsel %vm3730_vm3, %v3654_v57, %v2781_v22  ;;  %v1402_v28 = vsel %vm3730_vm3, %v3656_v58, %v2782_v21 }
 0x240   : > { %v2787_v29 = vunpack.i.h.bf16 %v2785_v26  ;;  %v2786_v30 = vunpack.i.l.bf16 %v2785_v26  ;;  %v1424_v31 = vpack.c.bf16 %v1402_v28, %v1401_v27  ;;  %v2790_v32 = vpop.permute.xlu0 %2789  ;;  %v719_v26 = vld [vmem:[#allocation3] sm:$0xf]  ;;  %v1139_v27 = vlaneseq }
 0x241   : > { %1836 = vrot.lane.b32.xlu0 %v1423_v25, %s3275_s11  ;;  %2548 = vmatprep.subr.bf16.mxu1 %v1423_v25  ;;  %v2792_v33 = vunpack.i.h.bf16 %v2790_v32  ;;  %v2791_v34 = vunpack.i.l.bf16 %v2790_v32  ;;  %v1056_v28 = vrot.slane %v719_v26, 2 }
 0x242   : > { %2549 = vmatpush3.bf16.msra.mxu1 %v1423_v25  ;;  %1838 = vrot.lane.b32.xlu1 %v1424_v31, %s3275_s11  ;;  %v1403_v35 = vsel %vm3730_vm3, %v3660_v60, %v2786_v30  ;;  %v1404_v36 = vsel %vm3730_vm3, %v3662_v61, %v2787_v29  ;;  %v3859_v29 = vshrl.u32 %v1139_v27, 7 }
 0x243   : > { %2550 = vmatprep.subr.bf16.mxu1 %v1424_v31  ;;  %v1425_v37 = vpack.c.bf16 %v1404_v36, %v1403_v35  ;;  %v2795_v38 = vpop.permute.xlu1 %2794  ;;  %v1405_v39 = vsel %vm3730_vm3, %v3666_v63, %v2791_v34  ;;  %v1406_v40 = vsel %vm3730_vm3, %v3668_v0, %v2792_v33  ;;  %v3863_v30 = vsel %vm3730_vm3, %v719_v26, %v1056_v28 }
 0x244   : > { %v2797_v41 = vunpack.i.h.bf16 %v2795_v38  ;;  %v2796_v42 = vunpack.i.l.bf16 %v2795_v38  ;;  %v1426_v43 = vpack.c.bf16 %v1406_v40, %v1405_v39  ;;  %v2800_v44 = vpop.permute.xlu0 %2799 }
 0x245   : > { %1840 = vrot.lane.b32.xlu0 %v1425_v37, %s3275_s11  ;;  %v2802_v45 = vunpack.i.h.bf16 %v2800_v44  ;;  %v2801_v46 = vunpack.i.l.bf16 %v2800_v44 }
 0x246   : > { %2551 = vmatpush3.bf16.msra.mxu1 %v1424_v31  ;;  %1842 = vrot.lane.b32.xlu1 %v1426_v43, %s3275_s11  ;;  %v1407_v47 = vsel %vm3730_vm3, %v3674_v3, %v2796_v42  ;;  %v1408_v48 = vsel %vm3730_vm3, %v3676_v4, %v2797_v41  ;;  %v1141_v31 = vsub.s32 0, %v3859_v29 }
 0x247   : > { %2552 = vmatprep.subr.bf16.mxu1 %v1425_v37  ;;  %v1427_v49 = vpack.c.bf16 %v1408_v48, %v1407_v47  ;;  %v1409_v50 = vsel %vm3730_vm3, %v3678_v5, %v2801_v46  ;;  %v1410_v51 = vsel %vm3730_vm3, %v3680_v6, %v2802_v45  ;;  %v2805_v53 = vpop.permute.xlu1 %2804 }
 0x248   : > { %v1428_v52 = vpack.c.bf16 %v1410_v51, %v1409_v50  ;;  %v2807_v54 = vunpack.i.h.bf16 %v2805_v53  ;;  %v2806_v55 = vunpack.i.l.bf16 %v2805_v53  ;;  %v2810_v56 = vpop.permute.xlu0 %2809  ;;  %v3867_v33 = vrot.slane %v3863_v30, %v1141_v31 }
 0x249   : > { %1844 = vrot.lane.b32.xlu0 %v1427_v49, %s3275_s11  ;;  %v2812_v57 = vunpack.i.h.bf16 %v2810_v56  ;;  %v2811_v58 = vunpack.i.l.bf16 %v2810_v56 }
 0x24a   : > { %2553 = vmatpush3.bf16.msra.mxu1 %v1425_v37  ;;  %1846 = vrot.lane.b32.xlu1 %v1428_v52, %s3275_s11  ;;  %v1411_v59 = vsel %vm3730_vm3, %v3688_v9, %v2806_v55  ;;  %v1412_v60 = vsel %vm3730_vm3, %v3690_v10, %v2807_v54 }
 0x24b   : > { %2554 = vmatprep.subr.bf16.mxu1 %v1426_v43  ;;  %v3782_v61 = vpack.c.bf16 %v1412_v60, %v1411_v59  ;;  %v1413_v62 = vsel %vm3730_vm3, %v3694_v11, %v2811_v58  ;;  %v1414_v63 = vsel %vm3730_vm3, %v3696_v12, %v2812_v57 }
 0x24c   : > { %v3791_v0 = vpack.c.bf16 %v1414_v63, %v1413_v62 }
 0x24e   : > { %2555 = vmatpush3.bf16.msra.mxu1 %v1426_v43 }
 0x24f   : > { %2556 = vmatprep.subr.bf16.mxu1 %v1427_v49 }
 0x252   : > { %2557 = vmatpush3.bf16.msra.mxu1 %v1427_v49 }
 0x253   : > { %2558 = vmatprep.subr.bf16.mxu1 %v1428_v52 }
 0x256   : > { %2559 = vmatpush3.bf16.msra.mxu1 %v1428_v52 }
 0x257   : > { %2560 = vmatprep.subr.bf16.mxu1 %v3782_v61 }
 0x25a   : > { %2561 = vmatpush3.bf16.msra.mxu1 %v3782_v61 }
 0x25b   : > { %2562 = vmatprep.subr.bf16.mxu1 %v3791_v0 }
 0x25e   : > { %2563 = vmatpush3.bf16.msra.mxu1 %v3791_v0 }
 0x2a2   : > { %v2526_v3 = vpop.f32.mrb[0].mxu0 }
 0x2a3   : > { %v3798_v4 = vpop.f32.mrb[1].mxu0  ;;  %993 = vrot.lane.b32.xlu0 %v2526_v3, %s3278_s7 }
 0x2a6   : > { %v3801_v5 = vpop.f32.mrb[2].mxu0 }
 0x2a7   : > { %v3803_v6 = vpop.f32.mrb[3].mxu0  ;;  %997 = vrot.lane.b32.xlu1 %v3801_v5, %s3278_s7  ;;  %991 = vrot.lane.b32.xlu0 %v3798_v4, %s3278_s7 }
 0x2aa   : > { %v3809_v7 = vpop.f32.mrb[4].mxu0 }
 0x2ab   : > { %v3811_v8 = vpop.f32.mrb[5].mxu0  ;;  %995 = vrot.lane.b32.xlu1 %v3803_v6, %s3278_s7 }
 0x2ac   : > { %999 = vrot.lane.b32.xlu0 %v3811_v8, %s3278_s7 }
 0x2ae   : > { %v3817_v9 = vpop.f32.mrb[6].mxu0 }
 0x2af   : > { %v3819_v10 = vpop.f32.mrb[7].mxu0  ;;  %1001 = vrot.lane.b32.xlu1 %v3809_v7, %s3278_s7 }
 0x2b0   : > { %1003 = vrot.lane.b32.xlu0 %v3819_v10, %s3278_s7 }
 0x2b2   : > { %v3825_v11 = vpop.f32.mrb[8].mxu0 }
 0x2b3   : > { %v1837_v12 = vpop.permute.xlu0 %1836  ;;  %v3827_v13 = vpop.f32.mrb[9].mxu0  ;;  %1005 = vrot.lane.b32.xlu1 %v3817_v9, %s3278_s7 }
 0x2b4   : > { %2580 = vmatprep.subr.bf16.mxu0 %v1837_v12  ;;  %v1839_v14 = vpop.permute.xlu1 %1838  ;;  %1007 = vrot.lane.b32.xlu0 %v3827_v13, %s3278_s7 }
 0x2b5   : > { %2581 = vmatpush3.bf16.msra.mxu0 %v1837_v12 }
 0x2b6   : > { %2582 = vmatprep.subr.bf16.mxu0 %v1839_v14  ;;  %v3833_v15 = vpop.f32.mrb[10].mxu0 }
 0x2b7   : > { %v1841_v16 = vpop.permute.xlu0 %1840  ;;  %v3835_v18 = vpop.f32.mrb[11].mxu0  ;;  %1009 = vrot.lane.b32.xlu1 %v3825_v11, %s3278_s7 }
 0x2b8   : > { %1011 = vrot.lane.b32.xlu0 %v3835_v18, %s3278_s7  ;;  %v1843_v20 = vpop.permute.xlu1 %1842 }
 0x2b9   : > { %2583 = vmatpush3.bf16.msra.mxu0 %v1839_v14 }
 0x2ba   : > { %2584 = vmatprep.subr.bf16.mxu0 %v1841_v16  ;;  %v3841_v19 = vpop.f32.mrb[12].mxu0 }
 0x2bb   : > { %v3843_v21 = vpop.f32.mrb[13].mxu0  ;;  %1013 = vrot.lane.b32.xlu1 %v3833_v15, %s3278_s7  ;;  %v1845_v23 = vpop.permute.xlu0 %1844 }
 0x2bc   : > { %1015 = vrot.lane.b32.xlu0 %v3843_v21, %s3278_s7  ;;  %v1847_v25 = vpop.permute.xlu1 %1846 }
 0x2bd   : > { %2585 = vmatpush3.bf16.msra.mxu0 %v1841_v16 }
 0x2be   : > { %2586 = vmatprep.subr.bf16.mxu0 %v1843_v20  ;;  %v3849_v22 = vpop.f32.mrb[14].mxu0 }
 0x2bf   : > { %v3851_v24 = vpop.f32.mrb[15].mxu0  ;;  %1017 = vrot.lane.b32.xlu1 %v3841_v19, %s3278_s7 }
 0x2c0   : > { %1019 = vrot.lane.b32.xlu0 %v3851_v24, %s3278_s7 }
 0x2c1   : > { %2587 = vmatpush3.bf16.msra.mxu0 %v1843_v20 }
 0x2c2   : > { %2588 = vmatprep.subr.bf16.mxu0 %v1845_v23 }
 0x2c3   : > { %1021 = vrot.lane.b32.xlu1 %v3849_v22, %s3278_s7 }
 0x2c5   : > { %2589 = vmatpush3.bf16.msra.mxu0 %v1845_v23 }
 0x2c6   : > { %2590 = vmatprep.subr.bf16.mxu0 %v1847_v25 }
 0x2c9   : > { %2591 = vmatpush3.bf16.msra.mxu0 %v1847_v25 }
 0x315   : > { %v994_v32 = vpop.permute.xlu0 %993 }
 0x316   : > { %v1040_v34 = vsel %vm3730_vm3, %v2526_v3, %v994_v32 }
 0x317   : > { %1066 = vperm.xlu0 %2814, %v1040_v34   ;;  %1565 = vperm.xlu1 %2813, %v1040_v34  }
 0x319   : > { %v998_v35 = vpop.permute.xlu1 %997  ;;  %v992_v36 = vpop.permute.xlu0 %991 }
 0x31a   : > { %v1039_v37 = vsel %vm3730_vm3, %v3798_v4, %v992_v36  ;;  %v1042_v39 = vsel %vm3730_vm3, %v3801_v5, %v998_v35  ;;  %v1626_v5 = vsub.s32 1, %v3859_v29 }
 0x31b   : > { %2815 = vset.pattern.permute.xlu0 %v3276_v1  ;;  %2816 = vset.pattern.permute.xlu1 %v3277_v2 }
 0x31c   : > { %1061 = vperm.xlu1 %2816, %v1039_v37   ;;  %1561 = vperm.xlu0 %2815, %v1039_v37  }
 0x31d   : > { %v996_v38 = vpop.permute.xlu1 %995 }
 0x31e   : > { %v1041_v42 = vsel %vm3730_vm3, %v3803_v6, %v996_v38  ;;  %v1000_v43 = vpop.permute.xlu0 %999  ;;  %v936_v6 = vld [vmem:[%s3605_s17] sm:$0xff] }
 0x31f   : > { %v1043_v44 = vsel %vm3730_vm3, %v3811_v8, %v1000_v43  ;;  %v941_v8 = vunpack.c.1.s8 %v936_v6  ;;  %v940_v12 = vunpack.c.0.s8 %v936_v6  ;;  %v942_v34 = vunpack.c.2.s8 %v936_v6 }
 0x320   : > { %1076 = vperm.xlu1 %2816, %v1042_v39   ;;  %1573 = vperm.xlu0 %2815, %v1042_v39   ;;  %v937_v39 = vld [vmem:[%s3605_s17 + $0x8] sm:$0xff] }
 0x321   : > { %v1002_v40 = vpop.permute.xlu1 %1001  ;;  %vm957_vm4 = vcmp.ne.s32.totalorder %v941_v8, 0  ;;  %vm956_vm7 = vcmp.ne.s32.totalorder %v940_v12, 0  ;;  %vm3976_vm13 = vcmp.ne.s32.totalorder %v942_v34, 0 }
 0x322   : > { %v1044_v41 = vsel %vm3730_vm3, %v3809_v7, %v1002_v40  ;;  %v1004_v47 = vpop.permute.xlu0 %1003  ;;  %v3942_v7 = vrot.slane %v3863_v30, %v1626_v5 }
 0x323   : > { %v1045_v48 = vsel %vm3730_vm3, %v3819_v10, %v1004_v47 }
 0x324   : > { %2817 = vset.pattern.permute.xlu1 %v3276_v1  ;;  %1581 = vperm.xlu0 %2815, %v1044_v41  }
 0x325   : > { %1569 = vperm.xlu1 %2817, %v1041_v42   ;;  %v1006_v45 = vpop.permute.xlu1 %1005 }
 0x326   : > { %v1046_v46 = vsel %vm3730_vm3, %v3817_v9, %v1006_v45  ;;  %v1008_v51 = vpop.permute.xlu0 %1007 }
 0x327   : > { %v1047_v53 = vsel %vm3730_vm3, %v3827_v13, %v1008_v51  ;;  %v944_v51 = vunpack.c.0.s8 %v937_v39 }
 0x328   : > { %2820 = vset.pattern.permute.xlu0 %v3277_v2 }
 0x329   : > { %2818 = vset.pattern.permute.xlu1 %v3277_v2  ;;  %1081 = vperm.xlu0 %2820, %v1043_v44   ;;  %v1010_v49 = vpop.permute.xlu1 %1009  ;;  %vm3991_vm1 = vcmp.ne.s32.totalorder %v944_v51, 0 }
 0x32a   : > { %1071 = vperm.xlu1 %2818, %v1041_v42   ;;  %v1048_v50 = vsel %vm3730_vm3, %v3825_v11, %v1010_v49  ;;  %v1012_v55 = vpop.permute.xlu0 %1011 }
 0x32b   : > { %v1049_v56 = vsel %vm3730_vm3, %v3835_v18, %v1012_v55 }
 0x32d   : > { %2821 = vset.pattern.permute.xlu0 %v3276_v1  ;;  %v1014_v52 = vpop.permute.xlu1 %1013 }
 0x32e   : > { %1086 = vperm.xlu1 %2818, %v1044_v41   ;;  %1589 = vperm.xlu0 %2821, %v1046_v46   ;;  %v1050_v54 = vsel %vm3730_vm3, %v3833_v15, %v1014_v52  ;;  %v1016_v57 = vpop.permute.xlu0 %1015 }
 0x32f   : > { %v1051_v59 = vsel %vm3730_vm3, %v3843_v21, %v1016_v57 }
 0x331   : > { %v1018_v58 = vpop.permute.xlu1 %1017 }
 0x332   : > { %2819 = vset.pattern.permute.xlu1 %v3276_v1  ;;  %2824 = vset.pattern.permute.xlu0 %v3277_v2  ;;  %v1052_v60 = vsel %vm3730_vm3, %v3841_v19, %v1018_v58  ;;  %v1020_v62 = vpop.permute.xlu0 %1019 }
 0x333   : > { %1577 = vperm.xlu1 %2819, %v1043_v44   ;;  %1091 = vperm.xlu0 %2824, %v1045_v48   ;;  %v1053_v3 = vsel %vm3730_vm3, %v3851_v24, %v1020_v62 }
 0x335   : > { %v1022_v63 = vpop.permute.xlu1 %1021 }
 0x336   : > { %v1054_v4 = vsel %vm3730_vm3, %v3849_v22, %v1022_v63  ;;  %v943_v22 = vunpack.c.3.s8 %v936_v6 }
 0x337   : > { %2822 = vset.pattern.permute.xlu1 %v3277_v2  ;;  %2825 = vset.pattern.permute.xlu0 %v3276_v1 }
 0x338   : > { %1096 = vperm.xlu1 %2822, %v1046_v46   ;;  %1597 = vperm.xlu0 %2825, %v1048_v50   ;;  %vm3957_vm10 = vcmp.ne.s32.totalorder %v943_v22, 0 }
 0x33c   : > { %2823 = vset.pattern.permute.xlu1 %v3276_v1  ;;  %2826 = vset.pattern.permute.xlu0 %v3277_v2 }
 0x33d   : > { %1106 = vperm.xlu0 %2826, %v1048_v50   ;;  %1585 = vperm.xlu1 %2823, %v1045_v48   ;;  %v945_v48 = vunpack.c.1.s8 %v937_v39 }
 0x33f   : > { %vm3986_vm0 = vcmp.ne.s32.totalorder %v945_v48, 0 }
 0x341   : > { %2828 = vset.pattern.permute.xlu0 %v3276_v1  ;;  %1593 = vperm.xlu1 %2823, %v1047_v53  }
 0x342   : > { %1605 = vperm.xlu0 %2828, %v1050_v54  }
 0x345   : > { %2827 = vset.pattern.permute.xlu1 %v3277_v2 }
 0x346   : > { %2829 = vset.pattern.permute.xlu0 %v3277_v2  ;;  %1101 = vperm.xlu1 %2827, %v1047_v53  }
 0x347   : > { %1116 = vperm.xlu0 %2829, %v1050_v54  }
 0x34a   : > { %2830 = vset.pattern.permute.xlu1 %v3276_v1 }
 0x34b   : > { %1111 = vperm.xlu0 %2829, %v1049_v56   ;;  %1601 = vperm.xlu1 %2830, %v1049_v56  }
 0x34f   : > { %2831 = vset.pattern.permute.xlu0 %v3276_v1  ;;  %1609 = vperm.xlu1 %2830, %v1051_v59  }
 0x350   : > { %1613 = vperm.xlu0 %2831, %v1052_v60  }
 0x353   : > { %2833 = vset.pattern.permute.xlu1 %v3277_v2 }
 0x354   : > { %2832 = vset.pattern.permute.xlu0 %v3277_v2  ;;  %1121 = vperm.xlu1 %2833, %v1051_v59  }
 0x355   : > { %1126 = vperm.xlu0 %2832, %v1052_v60   ;;  %v947_v60 = vunpack.c.3.s8 %v937_v39 }
 0x358   : > { %2836 = vset.pattern.permute.xlu1 %v3276_v1 }
 0x359   : > { %2834 = vset.pattern.permute.xlu0 %v3276_v1  ;;  %1617 = vperm.xlu1 %2836, %v1053_v3  }
 0x35a   : > { %1621 = vperm.xlu0 %2834, %v1054_v4  }
 0x35e   : > { %2835 = vset.pattern.permute.xlu0 %v3277_v2 }
 0x35f   : > { %1136 = vperm.xlu0 %2835, %v1054_v4  }
 0x363   : > { %1131 = vperm.xlu0 %2835, %v1053_v3  }
 0x367   : > { %2837 = vset.pattern.permute.xlu0 %v3276_v1 }
 0x396   : > { %v1566_v9 = vpop.permute.xlu1 %1565  ;;  %v1067_v10 = vpop.permute.xlu0 %1066 }
 0x397   : > { %v1629_v11 = vadd.f32 %v3942_v7, %v1566_v9  ;;  %v1144_v17 = vadd.f32 %v3867_v33, %v1067_v10 }
 0x399   : > { %vm1645_vm5 = vcmp.gt.f32.partialorder %v1629_v11, 0.0  ;;  %v1661_v2 = vmul.f32 0.2, %v1629_v11  ;;  %vm1160_vm6 = vcmp.gt.f32.partialorder %v1144_v17, 0.0  ;;  %v1176_v13 = vmul.f32 0.2, %v1144_v17 }
 0x39b   : > { %v1062_v1 = vpop.permute.xlu1 %1061  ;;  %v1562_v14 = vpop.permute.xlu0 %1561  ;;  %v1677_v15 = vsel %vm1645_vm5, %v1629_v11, %v1661_v2  ;;  %v1192_v16 = vsel %vm1160_vm6, %v1144_v17, %v1176_v13  ;;  %v946_v2 = vunpack.c.2.s8 %v937_v39 }
 0x39c   : > { %v1143_v18 = vadd.f32 %v3867_v33, %v1062_v1  ;;  %v1628_v19 = vadd.f32 %v3942_v7, %v1562_v14  ;;  %v3948_v20 = vsel %vm957_vm4, %v1677_v15, -1e+30  ;;  %v3950_v21 = vsel %vm957_vm4, %v1192_v16, -1e+30 }
 0x39d   : > { %1710 = vmax.xlane.f32.xlu1 %v3948_v20  ;;  %vm4006_vm4 = vcmp.ne.s32.totalorder %v947_v60, 0 }
 0x39e   : > { %vm1644_vm8 = vcmp.gt.f32.partialorder %v1628_v19, 0.0  ;;  %v1660_v23 = vmul.f32 0.2, %v1628_v19  ;;  %vm1159_vm9 = vcmp.gt.f32.partialorder %v1143_v18, 0.0  ;;  %v1175_v24 = vmul.f32 0.2, %v1143_v18 }
 0x39f   : > { %v1077_v25 = vpop.permute.xlu1 %1076  ;;  %v1574_v26 = vpop.permute.xlu0 %1573 }
 0x3a0   : > { %v1146_v27 = vadd.f32 %v3867_v33, %v1077_v25  ;;  %v1631_v28 = vadd.f32 %v3942_v7, %v1574_v26  ;;  %v1676_v29 = vsel %vm1644_vm8, %v1628_v19, %v1660_v23  ;;  %v1191_v30 = vsel %vm1159_vm9, %v1143_v18, %v1175_v24 }
 0x3a1   : > { %v3955_v31 = vsel %vm956_vm7, %v1676_v29, -1e+30  ;;  %v3961_v35 = vsel %vm956_vm7, %v1191_v30, -1e+30  ;;  %vm4025_vm7 = vcmp.ne.s32.totalorder %v946_v2, 0 }
 0x3a2   : > { %1708 = vmax.xlane.f32.xlu0 %v3955_v31  ;;  %vm1647_vm11 = vcmp.gt.f32.partialorder %v1631_v28, 0.0  ;;  %v1663_v36 = vmul.f32 0.2, %v1631_v28  ;;  %vm1162_vm12 = vcmp.gt.f32.partialorder %v1146_v27, 0.0  ;;  %v1178_v37 = vmul.f32 0.2, %v1146_v27 }
 0x3a3   : > { %v1582_v38 = vpop.permute.xlu0 %1581 }
 0x3a4   : > { %v1633_v40 = vadd.f32 %v3942_v7, %v1582_v38  ;;  %v1570_v41 = vpop.permute.xlu1 %1569  ;;  %v1679_v42 = vsel %vm1647_vm11, %v1631_v28, %v1663_v36  ;;  %v1194_v43 = vsel %vm1162_vm12, %v1146_v27, %v1178_v37 }
 0x3a5   : > { %v1630_v44 = vadd.f32 %v3942_v7, %v1570_v41  ;;  %v3969_v45 = vsel %vm3957_vm10, %v1679_v42, -1e+30  ;;  %v3973_v46 = vsel %vm3957_vm10, %v1194_v43, -1e+30 }
 0x3a6   : > { %1714 = vmax.xlane.f32.xlu1 %v3969_v45  ;;  %v1665_v49 = vmul.f32 0.2, %v1633_v40  ;;  %vm1649_vm15 = vcmp.gt.f32.partialorder %v1633_v40, 0.0 }
 0x3a7   : > { %vm1646_vm14 = vcmp.gt.f32.partialorder %v1630_v44, 0.0  ;;  %v1662_v50 = vmul.f32 0.2, %v1630_v44 }
 0x3a8   : > { %v1082_v52 = vpop.permute.xlu0 %1081  ;;  %v1681_v59 = vsel %vm1649_vm15, %v1633_v40, %v1665_v49  ;;  %v938_v40 = vld [vmem:[%s3605_s17 + $0x10] sm:$0xff] }
 0x3a9   : > { %v1147_v53 = vadd.f32 %v3867_v33, %v1082_v52  ;;  %v1072_v54 = vpop.permute.xlu1 %1071  ;;  %v1678_v55 = vsel %vm1646_vm14, %v1630_v44, %v1662_v50  ;;  %v3997_v6 = vsel %vm3986_vm0, %v1681_v59, -1e+30  ;;  %v949_v49 = vunpack.c.1.s8 %v938_v40 }
 0x3aa   : > { %v1145_v56 = vadd.f32 %v3867_v33, %v1072_v54  ;;  %v3984_v57 = vsel %vm3976_vm13, %v1678_v55, -1e+30  ;;  %v948_v52 = vunpack.c.0.s8 %v938_v40  ;;  %v950_v26 = vunpack.c.2.s8 %v938_v40 }
 0x3ab   : > { %1712 = vmax.xlane.f32.xlu1 %v3984_v57  ;;  %vm1163_vm2 = vcmp.gt.f32.partialorder %v1147_v53, 0.0  ;;  %v1179_v63 = vmul.f32 0.2, %v1147_v53  ;;  %vm4048_vm14 = vcmp.ne.s32.totalorder %v949_v49, 0 }
 0x3ac   : > { %vm1161_vm3 = vcmp.gt.f32.partialorder %v1145_v56, 0.0  ;;  %v1177_v3 = vmul.f32 0.2, %v1145_v56  ;;  %vm4062_vm15 = vcmp.ne.s32.totalorder %v948_v52, 0 }
 0x3ad   : > { %v1087_v4 = vpop.permute.xlu1 %1086  ;;  %v1590_v5 = vpop.permute.xlu0 %1589  ;;  %v1195_v8 = vsel %vm1163_vm2, %v1147_v53, %v1179_v63 }
 0x3ae   : > { %v1148_v9 = vadd.f32 %v3867_v33, %v1087_v4  ;;  %v1635_v10 = vadd.f32 %v3942_v7, %v1590_v5  ;;  %v1193_v11 = vsel %vm1161_vm3, %v1145_v56, %v1177_v3  ;;  %v4003_v17 = vsel %vm3991_vm1, %v1195_v8, -1e+30 }
 0x3af   : > { %1718 = vmax.xlane.f32.xlu1 %v3997_v6  ;;  %v4012_v13 = vsel %vm3976_vm13, %v1193_v11, -1e+30  ;;  %v951_v4 = vunpack.c.3.s8 %v938_v40 }
 0x3b0   : > { %vm1651_vm5 = vcmp.gt.f32.partialorder %v1635_v10, 0.0  ;;  %v1667_v1 = vmul.f32 0.2, %v1635_v10  ;;  %vm1164_vm6 = vcmp.gt.f32.partialorder %v1148_v9, 0.0  ;;  %v1180_v14 = vmul.f32 0.2, %v1148_v9 }
 0x3b1   : > { %vm4078_vm2 = vcmp.ne.s32.totalorder %v951_v4, 0 }
 0x3b2   : > { %v1578_v15 = vpop.permute.xlu1 %1577  ;;  %v1092_v16 = vpop.permute.xlu0 %1091  ;;  %v1683_v18 = vsel %vm1651_vm5, %v1635_v10, %v1667_v1  ;;  %v1196_v19 = vsel %vm1164_vm6, %v1148_v9, %v1180_v14  ;;  %vm966_vm5 = vcmp.ne.s32.totalorder %v950_v26, 0 }
 0x3b3   : > { %v1632_v22 = vadd.f32 %v3942_v7, %v1578_v15  ;;  %v1149_v23 = vadd.f32 %v3867_v33, %v1092_v16  ;;  %v4018_v24 = vsel %vm4006_vm4, %v1683_v18, -1e+30  ;;  %v4022_v25 = vsel %vm3986_vm0, %v1196_v19, -1e+30 }
 0x3b4   : > { %1722 = vmax.xlane.f32.xlu1 %v4018_v24 }
 0x3b5   : > { %vm1648_vm8 = vcmp.gt.f32.partialorder %v1632_v22, 0.0  ;;  %v1664_v27 = vmul.f32 0.2, %v1632_v22  ;;  %vm1165_vm9 = vcmp.gt.f32.partialorder %v1149_v23, 0.0  ;;  %v1181_v28 = vmul.f32 0.2, %v1149_v23 }
 0x3b7   : > { %v1097_v29 = vpop.permute.xlu1 %1096  ;;  %v1598_v30 = vpop.permute.xlu0 %1597  ;;  %v1680_v32 = vsel %vm1648_vm8, %v1632_v22, %v1664_v27  ;;  %v1197_v34 = vsel %vm1165_vm9, %v1149_v23, %v1181_v28  ;;  %v4083_v28 = vld [vmem:[%s3605_s17 + $0x18] sm:$0xff] }
 0x3b8   : > { %v1150_v36 = vadd.f32 %v3867_v33, %v1097_v29  ;;  %v4032_v37 = vsel %vm3991_vm1, %v1680_v32, -1e+30  ;;  %v4036_v38 = vsel %vm4025_vm7, %v1197_v34, -1e+30  ;;  %v1637_v39 = vadd.f32 %v3942_v7, %v1598_v30 }
 0x3b9   : > { %1716 = vmax.xlane.f32.xlu0 %v4032_v37  ;;  %v953_v49 = vunpack.c.1.s8 %v4083_v28 }
 0x3ba   : > { %vm1166_vm10 = vcmp.gt.f32.partialorder %v1150_v36, 0.0  ;;  %v1182_v41 = vmul.f32 0.2, %v1150_v36  ;;  %v1669_v51 = vmul.f32 0.2, %v1637_v39  ;;  %vm1653_vm13 = vcmp.gt.f32.partialorder %v1637_v39, 0.0 }
 0x3bc   : > { %v1586_v42 = vpop.permute.xlu1 %1585  ;;  %v1107_v43 = vpop.permute.xlu0 %1106  ;;  %v1198_v44 = vsel %vm1166_vm10, %v1150_v36, %v1182_v41  ;;  %v1685_v10 = vsel %vm1653_vm13, %v1637_v39, %v1669_v51  ;;  %vm4113_vm10 = vcmp.ne.s32.totalorder %v953_v49, 0 }
 0x3bd   : > { %v1634_v47 = vadd.f32 %v3942_v7, %v1586_v42  ;;  %v1152_v48 = vadd.f32 %v3867_v33, %v1107_v43  ;;  %v4045_v50 = vsel %vm4006_vm4, %v1198_v44, -1e+30  ;;  %v4073_v16 = vsel %vm4048_vm14, %v1685_v10, -1e+30 }
 0x3be   : > { %v952_v42 = vunpack.c.0.s8 %v4083_v28 }
 0x3bf   : > { %v1184_v53 = vmul.f32 0.2, %v1152_v48  ;;  %vm1650_vm11 = vcmp.gt.f32.partialorder %v1634_v47, 0.0  ;;  %v1666_v54 = vmul.f32 0.2, %v1634_v47  ;;  %vm1168_vm12 = vcmp.gt.f32.partialorder %v1152_v48, 0.0 }
 0x3c0   : > { %v1594_v55 = vpop.permute.xlu1 %1593  ;;  %vm4109_vm8 = vcmp.ne.s32.totalorder %v952_v42, 0 }
 0x3c1   : > { %v1636_v56 = vadd.f32 %v3942_v7, %v1594_v55  ;;  %v1606_v58 = vpop.permute.xlu0 %1605  ;;  %v1682_v59 = vsel %vm1650_vm11, %v1634_v47, %v1666_v54  ;;  %v1200_v62 = vsel %vm1168_vm12, %v1152_v48, %v1184_v53 }
 0x3c2   : > { %v1639_v63 = vadd.f32 %v3942_v7, %v1606_v58  ;;  %v4055_v3 = vsel %vm4025_vm7, %v1682_v59, -1e+30  ;;  %v4059_v5 = vsel %vm4048_vm14, %v1200_v62, -1e+30 }
 0x3c3   : > { %v1668_v8 = vmul.f32 0.2, %v1636_v56  ;;  %1720 = vmax.xlane.f32.xlu1 %v4055_v3  ;;  %vm1652_vm0 = vcmp.gt.f32.partialorder %v1636_v56, 0.0 }
 0x3c4   : > { %v1671_v11 = vmul.f32 0.2, %v1639_v63  ;;  %vm1655_vm1 = vcmp.gt.f32.partialorder %v1639_v63, 0.0 }
 0x3c5   : > { %v1102_v12 = vpop.permute.xlu1 %1101  ;;  %v1684_v2 = vsel %vm1652_vm0, %v1636_v56, %v1668_v8 }
 0x3c6   : > { %v1151_v1 = vadd.f32 %v3867_v33, %v1102_v12  ;;  %v1117_v14 = vpop.permute.xlu0 %1116  ;;  %v4069_v15 = vsel %vm4062_vm15, %v1684_v2, -1e+30  ;;  %v1687_v22 = vsel %vm1655_vm1, %v1639_v63, %v1671_v11 }
 0x3c7   : > { %v1154_v18 = vadd.f32 %v3867_v33, %v1117_v14  ;;  %1724 = vmax.xlane.f32.xlu0 %v4069_v15  ;;  %1726 = vmax.xlane.f32.xlu1 %v4073_v16  ;;  %v4087_v32 = vsel %vm4078_vm2, %v1687_v22, -1e+30  ;;  %v955_v22 = vunpack.c.3.s8 %v4083_v28 }
 0x3c8   : > { %v1183_v23 = vmul.f32 0.2, %v1151_v1  ;;  %vm1167_vm3 = vcmp.gt.f32.partialorder %v1151_v1, 0.0 }
 0x3c9   : > { %v1186_v27 = vmul.f32 0.2, %v1154_v18  ;;  %vm1170_vm4 = vcmp.gt.f32.partialorder %v1154_v18, 0.0  ;;  %vm4141_vm14 = vcmp.ne.s32.totalorder %v955_v22, 0 }
 0x3ca   : > { %v1602_v29 = vpop.permute.xlu1 %1601  ;;  %v1112_v30 = vpop.permute.xlu0 %1111  ;;  %v1199_v34 = vsel %vm1167_vm3, %v1151_v1, %v1183_v23 }
 0x3cb   : > { %v1638_v36 = vadd.f32 %v3942_v7, %v1602_v29  ;;  %v1153_v39 = vadd.f32 %v3867_v33, %v1112_v30  ;;  %1730 = vmax.xlane.f32.xlu1 %v4087_v32  ;;  %v4094_v40 = vsel %vm4062_vm15, %v1199_v34, -1e+30  ;;  %v1202_v41 = vsel %vm1170_vm4, %v1154_v18, %v1186_v27 }
 0x3cc   : > { %v4099_v43 = vsel %vm4078_vm2, %v1202_v41, -1e+30  ;;  %vm2053_vm4 = vcmask 64512  }
 0x3cd   : > { %v1670_v44 = vmul.f32 0.2, %v1638_v36  ;;  %v1185_v47 = vmul.f32 0.2, %v1153_v39  ;;  %vm1654_vm6 = vcmp.gt.f32.partialorder %v1638_v36, 0.0  ;;  %vm1169_vm7 = vcmp.gt.f32.partialorder %v1153_v39, 0.0 }
 0x3ce   : > { %v1610_v48 = vpop.permute.xlu1 %1609 }
 0x3cf   : > { %v1640_v51 = vadd.f32 %v3942_v7, %v1610_v48  ;;  %v1614_v52 = vpop.permute.xlu0 %1613  ;;  %v1686_v53 = vsel %vm1654_vm6, %v1638_v36, %v1670_v44  ;;  %v1201_v54 = vsel %vm1169_vm7, %v1153_v39, %v1185_v47  ;;  %v954_v39 = vunpack.c.2.s8 %v4083_v28 }
 0x3d0   : > { %v1641_v55 = vadd.f32 %v3942_v7, %v1614_v52  ;;  %v4104_v56 = vsel %vm966_vm5, %v1686_v53, -1e+30  ;;  %v4106_v58 = vsel %vm966_vm5, %v1201_v54, -1e+30  ;;  %vm2070_vm5 = vcmask 130048  }
 0x3d1   : > { %v1672_v59 = vmul.f32 0.2, %v1640_v51  ;;  %1728 = vmax.xlane.f32.xlu1 %v4104_v56  ;;  %vm1656_vm9 = vcmp.gt.f32.partialorder %v1640_v51, 0.0  ;;  %vm970_vm1 = vcmp.ne.s32.totalorder %v954_v39, 0 }
 0x3d2   : > { %v1673_v62 = vmul.f32 0.2, %v1641_v55  ;;  %vm1657_vm11 = vcmp.gt.f32.partialorder %v1641_v55, 0.0 }
 0x3d3   : > { %v1122_v4 = vpop.permute.xlu1 %1121  ;;  %v1688_v8 = vsel %vm1656_vm9, %v1640_v51, %v1672_v59 }
 0x3d4   : > { %v1155_v9 = vadd.f32 %v3867_v33, %v1122_v4  ;;  %v1127_v10 = vpop.permute.xlu0 %1126  ;;  %v4120_v11 = vsel %vm4109_vm8, %v1688_v8, -1e+30  ;;  %v1689_v12 = vsel %vm1657_vm11, %v1641_v55, %v1673_v62 }
 0x3d5   : > { %v1156_v2 = vadd.f32 %v3867_v33, %v1127_v10  ;;  %1732 = vmax.xlane.f32.xlu0 %v4120_v11  ;;  %v4126_v1 = vsel %vm4113_vm10, %v1689_v12, -1e+30 }
 0x3d6   : > { %v1187_v14 = vmul.f32 0.2, %v1155_v9  ;;  %1734 = vmax.xlane.f32.xlu1 %v4126_v1  ;;  %vm1171_vm12 = vcmp.gt.f32.partialorder %v1155_v9, 0.0 }
 0x3d7   : > { %v1188_v18 = vmul.f32 0.2, %v1156_v2  ;;  %vm1172_vm13 = vcmp.gt.f32.partialorder %v1156_v2, 0.0 }
 0x3d8   : > { %v1618_v19 = vpop.permute.xlu1 %1617  ;;  %v1203_v23 = vsel %vm1171_vm12, %v1155_v9, %v1187_v14 }
 0x3d9   : > { %v1642_v26 = vadd.f32 %v3942_v7, %v1618_v19  ;;  %v1622_v27 = vpop.permute.xlu0 %1621  ;;  %v4133_v29 = vsel %vm4109_vm8, %v1203_v23, -1e+30  ;;  %v1204_v30 = vsel %vm1172_vm13, %v1156_v2, %v1188_v18 }
 0x3da   : > { %v1643_v34 = vadd.f32 %v3942_v7, %v1622_v27  ;;  %v4138_v36 = vsel %vm4113_vm10, %v1204_v30, -1e+30 }
 0x3db   : > { %v1674_v41 = vmul.f32 0.2, %v1642_v26  ;;  %vm1658_vm0 = vcmp.gt.f32.partialorder %v1642_v26, 0.0 }
 0x3dc   : > { %v1675_v42 = vmul.f32 0.2, %v1643_v34  ;;  %vm1659_vm15 = vcmp.gt.f32.partialorder %v1643_v34, 0.0 }
 0x3dd   : > { %v1690_v28 = vsel %vm1658_vm0, %v1642_v26, %v1674_v41 }
 0x3de   : > { %v1137_v47 = vpop.permute.xlu0 %1136  ;;  %v1691_v48 = vsel %vm1659_vm15, %v1643_v34, %v1675_v42  ;;  %v4152_v54 = vsel %vm970_vm1, %v1690_v28, -1e+30 }
 0x3df   : > { %v1158_v49 = vadd.f32 %v3867_v33, %v1137_v47  ;;  %v4148_v7 = vsel %vm4141_vm14, %v1691_v48, -1e+30 }
 0x3e0   : > { %1738 = vmax.xlane.f32.xlu1 %v4148_v7 }
 0x3e1   : > { %v1190_v51 = vmul.f32 0.2, %v1158_v49  ;;  %vm1174_vm2 = vcmp.gt.f32.partialorder %v1158_v49, 0.0 }
 0x3e2   : > { %v1132_v52 = vpop.permute.xlu0 %1131 }
 0x3e3   : > { %v1157_v53 = vadd.f32 %v3867_v33, %v1132_v52  ;;  %v1206_v55 = vsel %vm1174_vm2, %v1158_v49, %v1190_v51 }
 0x3e4   : > { %1736 = vmax.xlane.f32.xlu1 %v4152_v54  ;;  %v4157_v59 = vsel %vm4141_vm14, %v1206_v55, -1e+30 }
 0x3e5   : > { %v1189_v60 = vmul.f32 0.2, %v1157_v53  ;;  %vm1173_vm3 = vcmp.gt.f32.partialorder %v1157_v53, 0.0 }
 0x3e7   : > { %v1205_v62 = vsel %vm1173_vm3, %v1157_v53, %v1189_v60 }
 0x3e8   : > { %v4159_v63 = vsel %vm970_vm1, %v1205_v62, -1e+30 }
 0x3eb   : > { %1848 = vrot.lane.b32.xlu0 %v3782_v61, %s3275_s11 }
 0x3f5   : > { %1850 = vrot.lane.b32.xlu1 %v3791_v0, %s3275_s11 }
 0x40a   : > { %1223 = vmax.xlane.f32.xlu0 %v3961_v35 }
 0x40e   : > { %1227 = vmax.xlane.f32.xlu0 %v4012_v13 }
 0x412   : > { %1229 = vmax.xlane.f32.xlu0 %v3973_v46 }
 0x416   : > { %1231 = vmax.xlane.f32.xlu0 %v4003_v17 }
 0x419   : > { %1225 = vmax.xlane.f32.xlu1 %v3950_v21 }
 0x41a   : > { %1233 = vmax.xlane.f32.xlu0 %v4022_v25 }
 0x41d   : > { %1239 = vmax.xlane.f32.xlu1 %v4094_v40 }
 0x41e   : > { %1235 = vmax.xlane.f32.xlu0 %v4036_v38 }
 0x421   : > { %1243 = vmax.xlane.f32.xlu1 %v4106_v58 }
 0x422   : > { %1237 = vmax.xlane.f32.xlu0 %v4045_v50 }
 0x425   : > { %1247 = vmax.xlane.f32.xlu1 %v4133_v29 }
 0x426   : > { %1241 = vmax.xlane.f32.xlu0 %v4059_v5 }
 0x429   : > { %1251 = vmax.xlane.f32.xlu1 %v4159_v63 }
 0x42a   : > { %v1711_v61 = vpop.xlane.xlu1 %1710  ;;  %1245 = vmax.xlane.f32.xlu0 %v4099_v43 }
 0x42b   : > { %v1741_v0 = vsub.f32 %v3948_v20, %v1711_v61 }
 0x42d   : > { %v1758_v33 = vmul.f32 1.442695, %v1741_v0 }
 0x42e   : > { %1249 = vmax.xlane.f32.xlu0 %v4138_v36 }
 0x42f   : > { %2838 = vpow2.f32 %v1758_v33  ;;  %v1709_v4 = vpop.xlane.xlu0 %1708 }
 0x430   : > { %v1740_v8 = vsub.f32 %v3955_v31, %v1709_v4 }
 0x432   : > { %v1756_v9 = vmul.f32 1.442695, %v1740_v8  ;;  %1253 = vmax.xlane.f32.xlu0 %v4157_v59 }
 0x433   : > { %v1715_v10 = vpop.xlane.xlu1 %1714 }
 0x434   : > { %2840 = vpow2.f32 %v1756_v9  ;;  %v1743_v12 = vsub.f32 %v3969_v45, %v1715_v10 }
 0x436   : > { %v1762_v2 = vmul.f32 1.442695, %v1743_v12 }
 0x438   : > { %2842 = vpow2.f32 %v1762_v2  ;;  %v1713_v14 = vpop.xlane.xlu1 %1712 }
 0x439   : > { %v2839_v18 = vpop.eup %2838  ;;  %v1742_v55 = vsub.f32 %v3984_v57, %v1713_v14 }
 0x43a   : > { %1790 = vadd.xlane.f32.xlu0 %v2839_v18 }
 0x43b   : > { %v1760_v4 = vmul.f32 1.442695, %v1742_v55 }
 0x43c   : > { %v1719_v20 = vpop.xlane.xlu1 %1718 }
 0x43d   : > { %v1745_v19 = vsub.f32 %v3997_v6, %v1719_v20 }
 0x43e   : > { %v2841_v22 = vpop.eup %2840 }
 0x43f   : > { %v1766_v23 = vmul.f32 1.442695, %v1745_v19  ;;  %1788 = vadd.xlane.f32.xlu1 %v2841_v22  ;;  %v1820_v26 = vpack.c.bf16 %v2839_v18, %v2841_v22 }
 0x441   : > { %2844 = vpow2.f32 %v1766_v23  ;;  %v1723_v31 = vpop.xlane.xlu1 %1722  ;;  %2596 = vmatprep.mubr.bf16.mxu0 %v1820_v26 }
 0x442   : > { %v4185_v27 = vpop.eup %2842  ;;  %v1747_v30 = vsub.f32 %v4018_v24, %v1723_v31 }
 0x443   : > { %1794 = vadd.xlane.f32.xlu0 %v4185_v27 }
 0x444   : > { %v1770_v45 = vmul.f32 1.442695, %v1747_v30 }
 0x446   : > { %2846 = vpow2.f32 %v1770_v45  ;;  %v1717_v24 = vpop.xlane.xlu0 %1716 }
 0x447   : > { %v1744_v62 = vsub.f32 %v4032_v37, %v1717_v24 }
 0x44b   : > { %v2845_v34 = vpop.eup %2844 }
 0x44c   : > { %1798 = vadd.xlane.f32.xlu0 %v2845_v34 }
 0x450   : > { %v4189_v39 = vpop.eup %2846  ;;  %v1721_v6 = vpop.xlane.xlu1 %1720 }
 0x451   : > { %1802 = vadd.xlane.f32.xlu0 %v4189_v39  ;;  %v1746_v8 = vsub.f32 %v4055_v3, %v1721_v6 }
 0x454   : > { %v1727_v41 = vpop.xlane.xlu1 %1726  ;;  %v1725_v28 = vpop.xlane.xlu0 %1724 }
 0x455   : > { %v1749_v42 = vsub.f32 %v4073_v16, %v1727_v41  ;;  %v1748_v57 = vsub.f32 %v4069_v15, %v1725_v28 }
 0x457   : > { %v1774_v44 = vmul.f32 1.442695, %v1749_v42  ;;  %v1772_v10 = vmul.f32 1.442695, %v1748_v57 }
 0x458   : > { %v1731_v47 = vpop.xlane.xlu1 %1730 }
 0x459   : > { %2848 = vpow2.f32 %v1774_v44  ;;  %v1751_v48 = vsub.f32 %v4087_v32, %v1731_v47  ;;  %v1764_v32 = vmul.f32 1.442695, %v1744_v62 }
 0x45b   : > { %v1778_v49 = vmul.f32 1.442695, %v1751_v48 }
 0x45d   : > { %2850 = vpow2.f32 %v1778_v49 }
 0x45e   : > { %v1729_v51 = vpop.xlane.xlu1 %1728 }
 0x45f   : > { %v1750_v18 = vsub.f32 %v4104_v56, %v1729_v51 }
 0x461   : > { %v1776_v15 = vmul.f32 1.442695, %v1750_v18 }
 0x462   : > { %v1733_v52 = vpop.xlane.xlu0 %1732 }
 0x463   : > { %v2849_v53 = vpop.eup %2848  ;;  %v1735_v60 = vpop.xlane.xlu1 %1734  ;;  %v1752_v20 = vsub.f32 %v4120_v11, %v1733_v52 }
 0x464   : > { %v1753_v61 = vsub.f32 %v4126_v1, %v1735_v60  ;;  %1806 = vadd.xlane.f32.xlu0 %v2849_v53  ;;  %v1768_v1 = vmul.f32 1.442695, %v1746_v8 }
 0x466   : > { %v1782_v16 = vmul.f32 1.442695, %v1753_v61  ;;  %v1849_v0 = vpop.permute.xlu0 %1848 }
 0x467   : > { %v2851_v33 = vpop.eup %2850  ;;  %2592 = vmatprep.subr.bf16.mxu0 %v1849_v0 }
 0x468   : > { %2852 = vpow2.f32 %v1782_v16  ;;  %1810 = vadd.xlane.f32.xlu0 %v2851_v33  ;;  %2593 = vmatpush3.bf16.msra.mxu0 %v1849_v0 }
 0x469   : > { %2854 = vpow2.f32 %v1760_v4 }
 0x46a   : > { %2856 = vpow2.f32 %v1764_v32 }
 0x46d   : > { %v1739_v9 = vpop.xlane.xlu1 %1738 }
 0x46e   : > { %v1755_v37 = vsub.f32 %v4148_v7, %v1739_v9  ;;  %v1780_v7 = vmul.f32 1.442695, %v1752_v20 }
 0x470   : > { %v1786_v12 = vmul.f32 1.442695, %v1755_v37 }
 0x471   : > { %v1737_v2 = vpop.xlane.xlu1 %1736 }
 0x472   : > { %v2853_v14 = vpop.eup %2852  ;;  %2858 = vpow2.f32 %v1786_v12  ;;  %v1754_v56 = vsub.f32 %v4152_v54, %v1737_v2 }
 0x473   : > { %2860 = vpow2.f32 %v1768_v1  ;;  %1814 = vadd.xlane.f32.xlu0 %v2853_v14  ;;  %v2855_v3 = vpop.eup %2854 }
 0x474   : > { %2862 = vpow2.f32 %v1772_v10  ;;  %v4202_v22 = vpop.eup %2856  ;;  %v1821_v23 = vpack.c.bf16 %v4185_v27, %v2855_v3  ;;  %v1784_v45 = vmul.f32 1.442695, %v1754_v56 }
 0x475   : > { %v1851_v19 = vpop.permute.xlu1 %1850  ;;  %v1822_v26 = vpack.c.bf16 %v2845_v34, %v4202_v22  ;;  %2864 = vpow2.f32 %v1776_v15 }
 0x476   : > { %2594 = vmatprep.subr.bf16.mxu0 %v1851_v19  ;;  %2866 = vpow2.f32 %v1780_v7 }
 0x477   : > { %2595 = vmatpush3.bf16.msra.mxu0 %v1851_v19  ;;  %2868 = vpow2.f32 %v1784_v45 }
 0x47a   : > { %2597 = vmatmul.mubr.bf16.vlgmr.msra.gmra.mrb[16].mxu0 %v1821_v23 }
 0x47b   : > { %2600 = vmatprep.mubr.bf16.mxu0 %v1822_v26 }
 0x47c   : > { %v2859_v31 = vpop.eup %2858 }
 0x47d   : > { %v2861_v11 = vpop.eup %2860  ;;  %1818 = vadd.xlane.f32.xlu0 %v2859_v31 }
 0x47e   : > { %v4207_v30 = vpop.eup %2862  ;;  %v1823_v6 = vpack.c.bf16 %v4189_v39, %v2861_v11 }
 0x47f   : > { %v1824_v41 = vpack.c.bf16 %v2849_v53, %v4207_v30  ;;  %v4211_v27 = vpop.eup %2864 }
 0x480   : > { %v4213_v34 = vpop.eup %2866  ;;  %v1825_v54 = vpack.c.bf16 %v2851_v33, %v4211_v27 }
 0x481   : > { %v1826_v42 = vpack.c.bf16 %v2853_v14, %v4213_v34  ;;  %v4217_v44 = vpop.eup %2868 }
 0x482   : > { %2601 = vmatmul.mubr.bf16.gmra.mrb[20].mxu0 %v1823_v6  ;;  %v1827_v47 = vpack.c.bf16 %v2859_v31, %v4217_v44 }
 0x483   : > { %2604 = vmatprep.mubr.bf16.mxu0 %v1824_v41 }
 0x48a   : > { %2605 = vmatmul.mubr.bf16.gmra.mrb[24].mxu0 %v1825_v54 }
 0x48b   : > { %2608 = vmatprep.mubr.bf16.mxu0 %v1826_v42 }
 0x492   : > { %2609 = vmatmul.mubr.bf16.gmra.mrb[28].mxu0 %v1827_v47 }
 0x497   : > { %v1224_v39 = vpop.xlane.xlu0 %1223 }
 0x498   : > { %v1255_v48 = vsub.f32 %v3961_v35, %v1224_v39 }
 0x49a   : > { %v1271_v24 = vmul.f32 1.442695, %v1255_v48 }
 0x49b   : > { %v1228_v49 = vpop.xlane.xlu0 %1227 }
 0x49c   : > { %2870 = vpow2.f32 %v1271_v24  ;;  %v1257_v51 = vsub.f32 %v4012_v13, %v1228_v49 }
 0x49e   : > { %v1275_v55 = vmul.f32 1.442695, %v1257_v51 }
 0x49f   : > { %v1230_v28 = vpop.xlane.xlu0 %1229 }
 0x4a0   : > { %v1258_v52 = vsub.f32 %v3973_v46, %v1230_v28  ;;  %2872 = vpow2.f32 %v1275_v55 }
 0x4a2   : > { %v1277_v62 = vmul.f32 1.442695, %v1258_v52 }
 0x4a3   : > { %v1232_v53 = vpop.xlane.xlu0 %1231 }
 0x4a4   : > { %v1259_v60 = vsub.f32 %v4003_v17, %v1232_v53  ;;  %2874 = vpow2.f32 %v1277_v62 }
 0x4a6   : > { %v2871_v61 = vpop.eup %2870  ;;  %v1279_v16 = vmul.f32 1.442695, %v1259_v60  ;;  %v1226_v0 = vpop.xlane.xlu1 %1225 }
 0x4a7   : > { %v1256_v33 = vsub.f32 %v3950_v21, %v1226_v0  ;;  %1303 = vadd.xlane.f32.xlu1 %v2871_v61  ;;  %v1234_v35 = vpop.xlane.xlu0 %1233 }
 0x4a8   : > { %v1260_v4 = vsub.f32 %v4022_v25, %v1234_v35  ;;  %2876 = vpow2.f32 %v1279_v16 }
 0x4a9   : > { %v1273_v32 = vmul.f32 1.442695, %v1256_v33 }
 0x4aa   : > { %v1281_v13 = vmul.f32 1.442695, %v1260_v4  ;;  %v1240_v46 = vpop.xlane.xlu1 %1239  ;;  %v2873_v1 = vpop.eup %2872 }
 0x4ab   : > { %2878 = vpow2.f32 %v1273_v32  ;;  %1792 = vadd.xlane.f32.xlu1 %v2855_v3  ;;  %v1236_v8 = vpop.xlane.xlu0 %1235  ;;  %v1263_v57 = vsub.f32 %v4094_v40, %v1240_v46 }
 0x4ac   : > { %2880 = vpow2.f32 %v1281_v13  ;;  %v1261_v17 = vsub.f32 %v4036_v38, %v1236_v8 }
 0x4ad   : > { %v1287_v10 = vmul.f32 1.442695, %v1263_v57 }
 0x4ae   : > { %v1244_v9 = vpop.xlane.xlu1 %1243  ;;  %v1283_v21 = vmul.f32 1.442695, %v1261_v17  ;;  %v2875_v14 = vpop.eup %2874 }
 0x4af   : > { %1796 = vadd.xlane.f32.xlu1 %v4202_v22  ;;  %v1238_v37 = vpop.xlane.xlu0 %1237  ;;  %v1265_v18 = vsub.f32 %v4106_v58, %v1244_v9  ;;  %v1416_v26 = vpack.c.bf16 %v2875_v14, %v2873_v1 }
 0x4b0   : > { %v1262_v25 = vsub.f32 %v4045_v50, %v1238_v37  ;;  %2882 = vpow2.f32 %v1283_v21 }
 0x4b1   : > { %v1291_v15 = vmul.f32 1.442695, %v1265_v18 }
 0x4b2   : > { %v1285_v12 = vmul.f32 1.442695, %v1262_v25  ;;  %v1248_v2 = vpop.xlane.xlu1 %1247  ;;  %v2877_v38 = vpop.eup %2876 }
 0x4b3   : > { %1800 = vadd.xlane.f32.xlu1 %v2861_v11  ;;  %v1242_v20 = vpop.xlane.xlu0 %1241  ;;  %v1267_v7 = vsub.f32 %v4133_v29, %v1248_v2 }
 0x4b4   : > { %2884 = vpow2.f32 %v1285_v12  ;;  %v1264_v40 = vsub.f32 %v4059_v5, %v1242_v20 }
 0x4b5   : > { %v2879_v3 = vpop.eup %2878  ;;  %2886 = vpow2.f32 %v1287_v10  ;;  %v1295_v11 = vmul.f32 1.442695, %v1267_v7 }
 0x4b6   : > { %v2881_v19 = vpop.eup %2880  ;;  %v1289_v22 = vmul.f32 1.442695, %v1264_v40  ;;  %1305 = vadd.xlane.f32.xlu0 %v2879_v3  ;;  %v1415_v50 = vpack.c.bf16 %v2879_v3, %v2871_v61  ;;  %v1252_v56 = vpop.xlane.xlu1 %1251 }
 0x4b7   : > { %1804 = vadd.xlane.f32.xlu1 %v4207_v30  ;;  %v1246_v23 = vpop.xlane.xlu0 %1245  ;;  %v1417_v58 = vpack.c.bf16 %v2881_v19, %v2877_v38  ;;  %v1269_v45 = vsub.f32 %v4159_v63, %v1252_v56 }
 0x4b8   : > { %2888 = vpow2.f32 %v1289_v22  ;;  %v1266_v31 = vsub.f32 %v4099_v43, %v1246_v23  ;;  %2564 = vmatprep.mubr.bf16.mxu1 %v1415_v50 }
 0x4b9   : > { %2565 = vmatmul.mubr.bf16.vlgmr.msra.gmra.mrb[0].mxu1 %v1416_v26  ;;  %2890 = vpow2.f32 %v1291_v15  ;;  %v1299_v43 = vmul.f32 1.442695, %v1269_v45 }
 0x4ba   : > { %v1293_v5 = vmul.f32 1.442695, %v1266_v31  ;;  %1309 = vadd.xlane.f32.xlu0 %v2875_v14  ;;  %2568 = vmatprep.mubr.bf16.mxu1 %v1417_v58  ;;  %v2883_v6 = vpop.eup %2882 }
 0x4bb   : > { %1808 = vadd.xlane.f32.xlu1 %v4211_v27  ;;  %v1250_v29 = vpop.xlane.xlu0 %1249 }
 0x4bc   : > { %2892 = vpow2.f32 %v1293_v5  ;;  %v1268_v30 = vsub.f32 %v4138_v36, %v1250_v29 }
 0x4bd   : > { %2894 = vpow2.f32 %v1295_v11 }
 0x4be   : > { %v2885_v41 = vpop.eup %2884  ;;  %v1297_v54 = vmul.f32 1.442695, %v1268_v30  ;;  %1313 = vadd.xlane.f32.xlu0 %v2881_v19 }
 0x4bf   : > { %1812 = vadd.xlane.f32.xlu1 %v4213_v34  ;;  %v1254_v42 = vpop.xlane.xlu0 %1253  ;;  %v1418_v47 = vpack.c.bf16 %v2885_v41, %v2883_v6  ;;  %v2887_v39 = vpop.eup %2886 }
 0x4c0   : > { %2896 = vpow2.f32 %v1297_v54  ;;  %v1270_v63 = vsub.f32 %v4157_v59, %v1254_v42 }
 0x4c1   : > { %2569 = vmatmul.mubr.bf16.gmra.mrb[4].mxu1 %v1418_v47  ;;  %2898 = vpow2.f32 %v1299_v43 }
 0x4c2   : > { %v2889_v27 = vpop.eup %2888  ;;  %v1301_v48 = vmul.f32 1.442695, %v1270_v63  ;;  %1317 = vadd.xlane.f32.xlu0 %v2885_v41 }
 0x4c3   : > { %1307 = vadd.xlane.f32.xlu1 %v2873_v1  ;;  %v1419_v36 = vpack.c.bf16 %v2889_v27, %v2887_v39  ;;  %v2891_v24 = vpop.eup %2890 }
 0x4c4   : > { %2900 = vpow2.f32 %v1301_v48 }
 0x4c5   : > { %2572 = vmatprep.mubr.bf16.mxu1 %v1419_v36 }
 0x4c6   : > { %v2893_v49 = vpop.eup %2892  ;;  %1321 = vadd.xlane.f32.xlu0 %v2889_v27 }
 0x4c7   : > { %1311 = vadd.xlane.f32.xlu1 %v2877_v38  ;;  %v1420_v34 = vpack.c.bf16 %v2893_v49, %v2891_v24  ;;  %v2895_v28 = vpop.eup %2894  ;;  %v1791_v16 = vpop.xlane.xlu0 %1790 }
 0x4c9   : > { %2573 = vmatmul.mubr.bf16.gmra.mrb[8].mxu1 %v1420_v34 }
 0x4ca   : > { %v2897_v51 = vpop.eup %2896  ;;  %1325 = vadd.xlane.f32.xlu0 %v2893_v49 }
 0x4cb   : > { %1816 = vadd.xlane.f32.xlu1 %v4217_v44  ;;  %v1421_v59 = vpack.c.bf16 %v2897_v51, %v2895_v28  ;;  %v2899_v52 = vpop.eup %2898 }
 0x4cc   : > { %v1789_v60 = vpop.xlane.xlu1 %1788 }
 0x4cd   : > { %2576 = vmatprep.mubr.bf16.mxu1 %v1421_v59 }
 0x4ce   : > { %v2901_v53 = vpop.eup %2900  ;;  %1329 = vadd.xlane.f32.xlu0 %v2897_v51 }
 0x4cf   : > { %1315 = vadd.xlane.f32.xlu1 %v2883_v6  ;;  %v1422_v55 = vpack.c.bf16 %v2901_v53, %v2899_v52 }
 0x4d0   : > { %v1795_v44 = vpop.xlane.xlu0 %1794 }
 0x4d1   : > { %2577 = vmatmul.mubr.bf16.gmra.mrb[12].mxu1 %v1422_v55 }
 0x4d2   : > { %1333 = vadd.xlane.f32.xlu0 %v2901_v53 }
 0x4d3   : > { %1319 = vadd.xlane.f32.xlu1 %v2887_v39 }
 0x4d7   : > { %1323 = vadd.xlane.f32.xlu1 %v2891_v24 }
 0x4d9   : > { %v1799_v35 = vpop.xlane.xlu0 %1798 }
 0x4db   : > { %1327 = vadd.xlane.f32.xlu1 %v2895_v28 }
 0x4de   : > { %v1803_v13 = vpop.xlane.xlu0 %1802 }
 0x4df   : > { %1331 = vadd.xlane.f32.xlu1 %v2899_v52 }
 0x4f1   : > { %v1807_v17 = vpop.xlane.xlu0 %1806 }
 0x4f5   : > { %v1811_v18 = vpop.xlane.xlu0 %1810 }
 0x500   : > { %v1815_v31 = vpop.xlane.xlu0 %1814 }
 0x50a   : > { %v1819_v42 = vpop.xlane.xlu0 %1818 }
 0x534   : > { %v4241_v62 = vpop.xlane.xlu1 %1303 }
 0x538   : > { %v1793_v61 = vpop.xlane.xlu1 %1792 }
 0x539   : > { %2902 = vrcp.f32 %v1793_v61 }
 0x53a   : > { %2904 = vrcp.f32 %v1791_v16 }
 0x53b   : > { %2906 = vrcp.f32 %v1789_v60 }
 0x53c   : > { %v1797_v0 = vpop.xlane.xlu1 %1796  ;;  %2908 = vrcp.f32 %v1795_v44 }
 0x540   : > { %v1801_v33 = vpop.xlane.xlu1 %1800 }
 0x541   : > { %2910 = vrcp.f32 %v1801_v33 }
 0x542   : > { %2912 = vrcp.f32 %v1803_v13 }
 0x543   : > { %v2903_v8 = vpop.eup %2902  ;;  %2914 = vrcp.f32 %v1797_v0 }
 0x544   : > { %v1805_v4 = vpop.xlane.xlu1 %1804  ;;  %v2905_v25 = vpop.eup %2904  ;;  %2916 = vrcp.f32 %v1799_v35 }
 0x545   : > { %v2907_v10 = vpop.eup %2906 }
 0x546   : > { %v2909_v20 = vpop.eup %2908 }
 0x548   : > { %v1809_v32 = vpop.xlane.xlu1 %1808 }
 0x549   : > { %2918 = vrcp.f32 %v1809_v32 }
 0x54a   : > { %2920 = vrcp.f32 %v1811_v18 }
 0x54b   : > { %v2911_v38 = vpop.eup %2910  ;;  %2922 = vrcp.f32 %v1805_v4 }
 0x54c   : > { %v1813_v46 = vpop.xlane.xlu1 %1812  ;;  %v2913_v7 = vpop.eup %2912  ;;  %2924 = vrcp.f32 %v1807_v17 }
 0x54d   : > { %v2598_v57 = vpop.f32.mrb[16].mxu0  ;;  %v2915_v26 = vpop.eup %2914  ;;  %2926 = vrcp.f32 %v1813_v46 }
 0x54e   : > { %v1975_v9 = vmul.f32 %v2903_v8, %v2598_v57  ;;  %v1894_v21 = vpop.f32.mrb[17].mxu0  ;;  %v2917_v5 = vpop.eup %2916  ;;  %2928 = vrcp.f32 %v1815_v31  ;;  %v4287_v31 = vstv %s2087_s24 }
 0x54f   : > { %v2599_v37 = vpop.f32.mrb[18].mxu0  ;;  %v1973_v14 = vmul.f32 %v2907_v10, %v1894_v21 }
 0x550   : > { %v1897_v1 = vpop.f32.mrb[19].mxu0  ;;  %2009 = vrot.lane.b32.xlu1 %v1975_v9, %s3279_s0  ;;  %v4244_v2 = vpop.xlane.xlu1 %1307  ;;  %v1976_v3 = vmul.f32 %v2909_v20, %v2599_v37 }
 0x551   : > { %v1974_v12 = vmul.f32 %v2905_v25, %v1897_v1  ;;  %v1306_v37 = vpop.xlane.xlu0 %1305 }
 0x553   : > { %2007 = vrot.lane.b32.xlu0 %v1974_v12, %s3279_s0  ;;  %v2919_v11 = vpop.eup %2918 }
 0x554   : > { %2005 = vrot.lane.b32.xlu1 %v1973_v14, %s3279_s0  ;;  %v1312_v50 = vpop.xlane.xlu1 %1311  ;;  %v2921_v43 = vpop.eup %2920 }
 0x555   : > { %v2602_v40 = vpop.f32.mrb[20].mxu0  ;;  %v2923_v39 = vpop.eup %2922 }
 0x556   : > { %v1979_v19 = vmul.f32 %v2911_v38, %v2602_v40  ;;  %v1910_v22 = vpop.f32.mrb[21].mxu0  ;;  %v2925_v48 = vpop.eup %2924 }
 0x557   : > { %v2603_v15 = vpop.f32.mrb[22].mxu0  ;;  %v1977_v58 = vmul.f32 %v2915_v26, %v1910_v22  ;;  %v2927_v24 = vpop.eup %2926 }
 0x558   : > { %v1913_v23 = vpop.f32.mrb[23].mxu0  ;;  %2017 = vrot.lane.b32.xlu0 %v1979_v19, %s3279_s0  ;;  %2011 = vrot.lane.b32.xlu1 %v1976_v3, %s3279_s0  ;;  %v1980_v56 = vmul.f32 %v2913_v7, %v2603_v15  ;;  %v1817_v45 = vpop.xlane.xlu1 %1816 }
 0x559   : > { %v1978_v30 = vmul.f32 %v2917_v5, %v1913_v23  ;;  %2930 = vrcp.f32 %v1817_v45  ;;  %v2929_v59 = vpop.eup %2928 }
 0x55a   : > { %2932 = vrcp.f32 %v1819_v42 }
 0x55b   : > { %2934 = vrcp.f32 %v4244_v2 }
 0x55c   : > { %2013 = vrot.lane.b32.xlu0 %v1977_v58, %s3279_s0  ;;  %2019 = vrot.lane.b32.xlu1 %v1980_v56, %s3279_s0  ;;  %2936 = vrcp.f32 %v4241_v62  ;;  %v1310_v62 = vpop.xlane.xlu0 %1309  ;;  %v1316_v38 = vpop.xlane.xlu1 %1315 }
 0x55d   : > { %v2606_v29 = vpop.f32.mrb[24].mxu0  ;;  %2938 = vrcp.f32 %v1312_v50 }
 0x55e   : > { %v1983_v6 = vmul.f32 %v2919_v11, %v2606_v29  ;;  %v1926_v41 = vpop.f32.mrb[25].mxu0  ;;  %2940 = vrcp.f32 %v1306_v37 }
 0x55f   : > { %v2607_v54 = vpop.f32.mrb[26].mxu0  ;;  %v1981_v63 = vmul.f32 %v2923_v39, %v1926_v41  ;;  %2942 = vrcp.f32 %v1310_v62 }
 0x560   : > { %v1929_v47 = vpop.f32.mrb[27].mxu0  ;;  %2025 = vrot.lane.b32.xlu0 %v1983_v6, %s3279_s0  ;;  %2015 = vrot.lane.b32.xlu1 %v1978_v30, %s3279_s0  ;;  %v1984_v27 = vmul.f32 %v2921_v43, %v2607_v54  ;;  %v1314_v14 = vpop.xlane.xlu0 %1313  ;;  %2944 = vrcp.f32 %v1316_v38 }
 0x561   : > { %v1982_v49 = vmul.f32 %v2925_v48, %v1929_v47  ;;  %v1320_v22 = vpop.xlane.xlu1 %1319 }
 0x563   : > { %v2931_v55 = vpop.eup %2930 }
 0x564   : > { %2021 = vrot.lane.b32.xlu0 %v1981_v63, %s3279_s0  ;;  %2027 = vrot.lane.b32.xlu1 %v1984_v27, %s3279_s0  ;;  %v2933_v61 = vpop.eup %2932  ;;  %v1318_v19 = vpop.xlane.xlu0 %1317 }
 0x565   : > { %v2610_v36 = vpop.f32.mrb[28].mxu0  ;;  %v2935_v0 = vpop.eup %2934  ;;  %2946 = vrcp.f32 %v1318_v19 }
 0x566   : > { %v1942_v34 = vpop.f32.mrb[29].mxu0  ;;  %v1987_v60 = vmul.f32 %v2931_v55, %v2610_v36  ;;  %v2937_v33 = vpop.eup %2936  ;;  %2948 = vrcp.f32 %v1314_v14 }
 0x567   : > { %v1985_v28 = vmul.f32 %v2927_v24, %v1942_v34  ;;  %v2611_v51 = vpop.f32.mrb[30].mxu0  ;;  %v2939_v17 = vpop.eup %2938 }
 0x568   : > { %v1945_v52 = vpop.f32.mrb[31].mxu0  ;;  %2023 = vrot.lane.b32.xlu1 %v1982_v49, %s3279_s0  ;;  %v1988_v16 = vmul.f32 %v2933_v61, %v2611_v51  ;;  %v1322_v50 = vpop.xlane.xlu0 %1321 }
 0x569   : > { %v1986_v53 = vmul.f32 %v2929_v59, %v1945_v52  ;;  %2029 = vrot.lane.b32.xlu0 %v1985_v28, %s3279_s0  ;;  %v1324_v15 = vpop.xlane.xlu1 %1323  ;;  %v2941_v11 = vpop.eup %2940 }
 0x56a   : > { %2950 = vrcp.f32 %v1324_v15  ;;  %v2943_v42 = vpop.eup %2942 }
 0x56b   : > { %v2945_v63 = vpop.eup %2944 }
 0x56c   : > { %2031 = vrot.lane.b32.xlu1 %v1986_v53, %s3279_s0  ;;  %v1326_v7 = vpop.xlane.xlu0 %1325 }
 0x56d   : > { %2033 = vrot.lane.b32.xlu0 %v1987_v60, %s3279_s0  ;;  %v1328_v23 = vpop.xlane.xlu1 %1327  ;;  %2952 = vrcp.f32 %v1326_v7 }
 0x56e   : > { %2954 = vrcp.f32 %v1320_v22 }
 0x56f   : > { %v2947_v52 = vpop.eup %2946  ;;  %2956 = vrcp.f32 %v1322_v50 }
 0x570   : > { %2035 = vrot.lane.b32.xlu1 %v1988_v16, %s3279_s0  ;;  %v1330_v26 = vpop.xlane.xlu0 %1329  ;;  %2958 = vrcp.f32 %v1328_v23 }
 0x571   : > { %v1332_v58 = vpop.xlane.xlu1 %1331  ;;  %2960 = vrcp.f32 %v1330_v26 }
 0x572   : > { %2962 = vrcp.f32 %v1332_v58 }
 0x574   : > { %v4285_v56 = vpop.xlane.xlu0 %1333 }
 0x575   : > { %2964 = vrcp.f32 %v4285_v56 }
 0x58c   : > { %v2566_v44 = vpop.f32.mrb[0].mxu1 }
 0x58d   : > { %v1546_v35 = vmul.f32 %v2935_v0, %v2566_v44  ;;  %v1465_v4 = vpop.f32.mrb[1].mxu1 }
 0x58e   : > { %v1544_v32 = vmul.f32 %v2937_v33, %v1465_v4  ;;  %v2567_v13 = vpop.f32.mrb[2].mxu1  ;;  %v2949_v33 = vpop.eup %2948 }
 0x58f   : > { %v1468_v46 = vpop.f32.mrb[3].mxu1  ;;  %v1547_v36 = vmul.f32 %v2943_v42, %v2567_v13 }
 0x590   : > { %v1545_v29 = vmul.f32 %v2941_v11, %v1468_v46 }
 0x594   : > { %v2570_v8 = vpop.f32.mrb[4].mxu1 }
 0x595   : > { %v1481_v57 = vpop.f32.mrb[5].mxu1  ;;  %v1550_v24 = vmul.f32 %v2945_v63, %v2570_v8 }
 0x596   : > { %v4263_v9 = vmul.f32 %v2939_v17, %v1481_v57  ;;  %v2571_v21 = vpop.f32.mrb[6].mxu1 }
 0x597   : > { %v4265_v25 = vpop.f32.mrb[7].mxu1  ;;  %v1551_v60 = vmul.f32 %v2947_v52, %v2571_v21 }
 0x598   : > { %v1549_v8 = vmul.f32 %v2949_v33, %v4265_v25 }
 0x59c   : > { %v4267_v1 = vpop.f32.mrb[8].mxu1 }
 0x59d   : > { %v4269_v10 = vpop.f32.mrb[9].mxu1 }
 0x59e   : > { %v4271_v12 = vpop.f32.mrb[10].mxu1 }
 0x59f   : > { %v4273_v2 = vpop.f32.mrb[11].mxu1 }
 0x5a4   : > { %v4275_v18 = vpop.f32.mrb[12].mxu1 }
 0x5a5   : > { %v4277_v20 = vpop.f32.mrb[13].mxu1 }
 0x5a6   : > { %v4279_v40 = vpop.f32.mrb[14].mxu1 }
 0x5a7   : > { %v4281_v3 = vpop.f32.mrb[15].mxu1 }
 0x5c2   : > { %v2010_v5 = vpop.permute.xlu1 %2009 }
 0x5c3   : > { %v2056_v45 = vsel %vm2053_vm4, %v1546_v35, %v2010_v5 }
 0x5c4   : > { %v2073_v30 = vsel %vm2070_vm5, %v2056_v45, 0.0 }
 0x5c5   : > { %v4292_v6 = vmul.f32 %v4287_v31, %v2073_v30  ;;  %v2008_v41 = vpop.permute.xlu0 %2007 }
 0x5c6   : > { %v2055_v54 = vsel %vm2053_vm4, %v1545_v29, %v2008_v41  ;;  %v2006_v43 = vpop.permute.xlu1 %2005 }
 0x5c7   : > { %v2072_v47 = vsel %vm2070_vm5, %v2055_v54, 0.0  ;;  %v2054_v39 = vsel %vm2053_vm4, %v1544_v32, %v2006_v43  ;;  %v2951_v32 = vpop.eup %2950  ;;  %2110 = vst [vmem:[#allocation16 + $0x10] sm:$0xff] (!%p2354_p7), %v4292_v6 }
 0x5c8   : > { %v4298_v27 = vmul.f32 %v4287_v31, %v2072_v47  ;;  %v2071_v48 = vsel %vm2070_vm5, %v2054_v39, 0.0  ;;  %v1554_v17 = vmul.f32 %v2951_v32, %v4267_v1  ;;  %v2953_v14 = vpop.eup %2952 }
 0x5c9   : > { %v4302_v49 = vmul.f32 %v4287_v31, %v2071_v48  ;;  %v2955_v19 = vpop.eup %2954  ;;  %v1555_v50 = vmul.f32 %v2953_v14, %v4271_v12 }
 0x5ca   : > { %v2012_v34 = vpop.permute.xlu1 %2011  ;;  %v2018_v28 = vpop.permute.xlu0 %2017  ;;  %v1552_v22 = vmul.f32 %v2955_v19, %v4269_v10  ;;  %2109 = vst [vmem:[#allocation16 + $0x8] sm:$0xff] (!%p2354_p7), %v4298_v27 }
 0x5cb   : > { %v2057_v51 = vsel %vm2053_vm4, %v1547_v36, %v2012_v34  ;;  %v2060_v59 = vsel %vm2053_vm4, %v1550_v24, %v2018_v28  ;;  %v2957_v11 = vpop.eup %2956  ;;  %2108 = vst [vmem:[#allocation16] sm:$0xff] (!%p2354_p7), %v4302_v49 }
 0x5cc   : > { %v2074_v53 = vsel %vm2070_vm5, %v2057_v51, 0.0  ;;  %v2077_v55 = vsel %vm2070_vm5, %v2060_v59, 0.0  ;;  %v2959_v12 = vpop.eup %2958  ;;  %v1553_v29 = vmul.f32 %v2957_v11, %v4273_v2 }
 0x5cd   : > { %v4309_v61 = vmul.f32 %v4287_v31, %v2074_v53  ;;  %v4312_v16 = vmul.f32 %v4287_v31, %v2077_v55  ;;  %v1556_v56 = vmul.f32 %v2959_v12, %v4277_v20  ;;  %v2961_v47 = vpop.eup %2960 }
 0x5ce   : > { %v2020_v0 = vpop.permute.xlu1 %2019  ;;  %v2014_v44 = vpop.permute.xlu0 %2013  ;;  %v1557_v2 = vmul.f32 %v2961_v47, %v4281_v3 }
 0x5cf   : > { %v2061_v35 = vsel %vm2053_vm4, %v1551_v60, %v2020_v0  ;;  %v2058_v4 = vsel %vm2053_vm4, %v4263_v9, %v2014_v44  ;;  %v2963_v48 = vpop.eup %2962  ;;  %2111 = vst [vmem:[#allocation16 + $0x18] sm:$0xff] (!%p2354_p7), %v4309_v61  ;;  %2114 = vst [vmem:[#allocation16 + $0x30] sm:$0xff] (!%p2354_p7), %v4312_v16 }
 0x5d0   : > { %v2078_v13 = vsel %vm2070_vm5, %v2061_v35, 0.0  ;;  %v2075_v46 = vsel %vm2070_vm5, %v2058_v4, 0.0  ;;  %v1558_v34 = vmul.f32 %v2963_v48, %v4275_v18  ;;  %v2965_v52 = vpop.eup %2964 }
 0x5d1   : > { %v4322_v57 = vmul.f32 %v4287_v31, %v2078_v13  ;;  %v4325_v21 = vmul.f32 %v4287_v31, %v2075_v46  ;;  %v1559_v3 = vmul.f32 %v2965_v52, %v4279_v40 }
 0x5d2   : > { %v2016_v37 = vpop.permute.xlu1 %2015  ;;  %v2026_v62 = vpop.permute.xlu0 %2025 }
 0x5d3   : > { %v2059_v9 = vsel %vm2053_vm4, %v1549_v8, %v2016_v37  ;;  %v2064_v38 = vsel %vm2053_vm4, %v1554_v17, %v2026_v62  ;;  %2112 = vst [vmem:[#allocation16 + $0x20] sm:$0xff] (!%p2354_p7), %v4325_v21  ;;  %2115 = vst [vmem:[#allocation16 + $0x38] sm:$0xff] (!%p2354_p7), %v4322_v57 }
 0x5d4   : > { %v2076_v25 = vsel %vm2070_vm5, %v2059_v9, 0.0  ;;  %v2081_v1 = vsel %vm2070_vm5, %v2064_v38, 0.0 }
 0x5d5   : > { %v4334_v15 = vmul.f32 %v4287_v31, %v2076_v25  ;;  %v4337_v7 = vmul.f32 %v4287_v31, %v2081_v1 }
 0x5d6   : > { %v2028_v23 = vpop.permute.xlu1 %2027  ;;  %v2022_v26 = vpop.permute.xlu0 %2021 }
 0x5d7   : > { %v2065_v58 = vsel %vm2053_vm4, %v1555_v50, %v2028_v23  ;;  %v2062_v5 = vsel %vm2053_vm4, %v1552_v22, %v2022_v26  ;;  %2113 = vst [vmem:[#allocation16 + $0x28] sm:$0xff] (!%p2354_p7), %v4334_v15  ;;  %2118 = vst [vmem:[#allocation16 + $0x50] sm:$0xff] (!%p2354_p7), %v4337_v7 }
 0x5d8   : > { %v2082_v45 = vsel %vm2070_vm5, %v2065_v58, 0.0  ;;  %v2079_v10 = vsel %vm2070_vm5, %v2062_v5, 0.0 }
 0x5d9   : > { %v4346_v30 = vmul.f32 %v4287_v31, %v2082_v45  ;;  %v4349_v41 = vmul.f32 %v4287_v31, %v2079_v10 }
 0x5da   : > { %v2024_v54 = vpop.permute.xlu1 %2023 }
 0x5db   : > { %v2063_v43 = vsel %vm2053_vm4, %v1553_v29, %v2024_v54  ;;  %v2030_v42 = vpop.permute.xlu0 %2029  ;;  %2116 = vst [vmem:[#allocation16 + $0x40] sm:$0xff] (!%p2354_p7), %v4349_v41  ;;  %2119 = vst [vmem:[#allocation16 + $0x58] sm:$0xff] (!%p2354_p7), %v4346_v30 }
 0x5dc   : > { %v2080_v39 = vsel %vm2070_vm5, %v2063_v43, 0.0  ;;  %v2066_v63 = vsel %vm2053_vm4, %v1556_v56, %v2030_v42 }
 0x5dd   : > { %v4357_v36 = vmul.f32 %v4287_v31, %v2080_v39  ;;  %v2083_v24 = vsel %vm2070_vm5, %v2066_v63, 0.0 }
 0x5de   : > { %v4362_v20 = vmul.f32 %v4287_v31, %v2083_v24  ;;  %v2032_v28 = vpop.permute.xlu1 %2031 }
 0x5df   : > { %v2067_v51 = vsel %vm2053_vm4, %v1557_v2, %v2032_v28  ;;  %v2034_v59 = vpop.permute.xlu0 %2033  ;;  %2107 = sbr.rel (%p2354_p7) target bundleno = 1512 (0x5e8), region = 84  ;;  %2117 = vst [vmem:[#allocation16 + $0x48] sm:$0xff] (!%p2354_p7), %v4357_v36 }
 0x5e0   : > { %v2084_v53 = vsel %vm2070_vm5, %v2067_v51, 0.0  ;;  %v2068_v55 = vsel %vm2053_vm4, %v1558_v34, %v2034_v59  ;;  %2120 = vst [vmem:[#allocation16 + $0x60] sm:$0xff] (!%p2354_p7), %v4362_v20 }
 0x5e1   : > { %v4369_v60 = vmul.f32 %v4287_v31, %v2084_v53  ;;  %v2085_v0 = vsel %vm2070_vm5, %v2068_v55, 0.0 }
 0x5e2   : > { %v4373_v18 = vmul.f32 %v4287_v31, %v2085_v0  ;;  %v2036_v44 = vpop.permute.xlu1 %2035 }
 0x5e3   : > { %v2069_v33 = vsel %vm2053_vm4, %v1559_v3, %v2036_v44  ;;  %2121 = vst [vmem:[#allocation16 + $0x68] sm:$0xff] (!%p2354_p7), %v4369_v60 }
 0x5e4   : > { %v2086_v35 = vsel %vm2070_vm5, %v2069_v33, 0.0  ;;  %2122 = vst [vmem:[#allocation16 + $0x70] sm:$0xff] (!%p2354_p7), %v4373_v18 }
 0x5e5   : > { %v4378_v4 = vmul.f32 %v4287_v31, %v2086_v35 }
 0x5e7   : > { %2123 = vst [vmem:[#allocation16 + $0x78] sm:$0xff] %v4378_v4 }
 0x5e8 PF: > { %p2389_p0 = scmp.ne.s32.totalorder %s3252_s27, 1 }
 0x5e9   : > { %v2128_v40 = vld [vmem:[#allocation16] sm:$0xff] (!%p2389_p0)  ;;  %v2390_v31 = vld [vmem:[#allocation13] ss:$0 sm:$0xff] (!%p2389_p0)  ;;  %v2129_v32 = vld [vmem:[#allocation16 + $0x8] sm:$0xff] (!%p2389_p0) }
 0x5ea   : > { %2127 = sbr.rel (%p2389_p0) target bundleno = 1527 (0x5f7), region = 88  ;;  %v2144_v13 = vadd.f32 (!%p2389_p0), %v2128_v40, %v4302_v49  ;;  %v2145_v46 = vadd.f32 (!%p2389_p0), %v2129_v32, %v4298_v27  ;;  %v2130_v8 = vld [vmem:[#allocation16 + $0x10] sm:$0xff] (!%p2389_p0)  ;;  %v2131_v17 = vld [vmem:[#allocation16 + $0x18] sm:$0xff] (!%p2389_p0)  ;;  %v2132_v37 = vld [vmem:[#allocation16 + $0x20] sm:$0xff] (!%p2389_p0) }
 0x5eb   : > { %v2146_v62 = vadd.f32 (!%p2389_p0), %v2130_v8, %v4292_v6  ;;  %v2147_v14 = vadd.f32 (!%p2389_p0), %v2131_v17, %v4309_v61  ;;  %v2148_v9 = vadd.f32 (!%p2389_p0), %v2132_v37, %v4325_v21  ;;  %v2133_v38 = vld [vmem:[#allocation16 + $0x28] sm:$0xff] (!%p2389_p0)  ;;  %v2134_v19 = vld [vmem:[#allocation16 + $0x30] sm:$0xff] (!%p2389_p0)  ;;  %v2135_v25 = vld [vmem:[#allocation16 + $0x38] sm:$0xff] (!%p2389_p0) }
 0x5ec   : > { %v2167_v1 = vadd.f32 (!%p2389_p0), %v2390_v31, %v2144_v13  ;;  %v2168_v22 = vadd.f32 (!%p2389_p0), %v2390_v31, %v2145_v46  ;;  %v2149_v50 = vadd.f32 (!%p2389_p0), %v2133_v38, %v4334_v15  ;;  %v2150_v49 = vadd.f32 (!%p2389_p0), %v2134_v19, %v4312_v16  ;;  %v2136_v23 = vld [vmem:[#allocation16 + $0x40] sm:$0xff] (!%p2389_p0)  ;;  %v2137_v27 = vld [vmem:[#allocation16 + $0x48] sm:$0xff] (!%p2389_p0)  ;;  %v2138_v26 = vld [vmem:[#allocation16 + $0x50] sm:$0xff] (!%p2389_p0) }
 0x5ed   : > { %v2169_v58 = vadd.f32 (!%p2389_p0), %v2390_v31, %v2146_v62  ;;  %v2170_v5 = vadd.f32 (!%p2389_p0), %v2390_v31, %v2147_v14  ;;  %v2171_v11 = vadd.f32 (!%p2389_p0), %v2390_v31, %v2148_v9  ;;  %v2151_v6 = vadd.f32 (!%p2389_p0), %v2135_v25, %v4322_v57  ;;  %v2139_v61 = vld [vmem:[#allocation16 + $0x58] sm:$0xff] (!%p2389_p0)  ;;  %v2140_v45 = vld [vmem:[#allocation16 + $0x60] sm:$0xff] (!%p2389_p0)  ;;  %v2141_v21 = vld [vmem:[#allocation16 + $0x68] sm:$0xff] (!%p2389_p0) }
 0x5ee   : > { %2183 = vst [vmem:[#allocation16] sm:$0xff] (!%p2389_p0), %v2167_v1  ;;  %2184 = vst [vmem:[#allocation16 + $0x8] sm:$0xff] (!%p2389_p0), %v2168_v22  ;;  %v2172_v10 = vadd.f32 (!%p2389_p0), %v2390_v31, %v2149_v50  ;;  %v2173_v12 = vadd.f32 (!%p2389_p0), %v2390_v31, %v2150_v49  ;;  %v2152_v29 = vadd.f32 (!%p2389_p0), %v2136_v23, %v4349_v41  ;;  %v2142_v16 = vld [vmem:[#allocation16 + $0x70] sm:$0xff] (!%p2389_p0)  ;;  %v2143_v56 = vld [vmem:[#allocation16 + $0x78] sm:$0xff] (!%p2389_p0) }
 0x5ef   : > { %v2153_v15 = vadd.f32 (!%p2389_p0), %v2137_v27, %v4357_v36  ;;  %2185 = vst [vmem:[#allocation16 + $0x10] sm:$0xff] (!%p2389_p0), %v2169_v58  ;;  %2186 = vst [vmem:[#allocation16 + $0x18] sm:$0xff] (!%p2389_p0), %v2170_v5  ;;  %v2174_v54 = vadd.f32 (!%p2389_p0), %v2390_v31, %v2151_v6  ;;  %v2154_v43 = vadd.f32 (!%p2389_p0), %v2138_v26, %v4337_v7 }
 0x5f0   : > { %2187 = vst [vmem:[#allocation16 + $0x20] sm:$0xff] (!%p2389_p0), %v2171_v11  ;;  %v2155_v57 = vadd.f32 (!%p2389_p0), %v2139_v61, %v4346_v30  ;;  %v2156_v42 = vadd.f32 (!%p2389_p0), %v2140_v45, %v4362_v20  ;;  %2188 = vst [vmem:[#allocation16 + $0x28] sm:$0xff] (!%p2389_p0), %v2172_v10  ;;  %v2175_v47 = vadd.f32 (!%p2389_p0), %v2390_v31, %v2152_v29 }
 0x5f1   : > { %2189 = vst [vmem:[#allocation16 + $0x30] sm:$0xff] %v2173_v12  ;;  %v2176_v39 = vadd.f32 %v2390_v31, %v2153_v15  ;;  %v2157_v41 = vadd.f32 %v2141_v21, %v4369_v60  ;;  %v2158_v63 = vadd.f32 %v2142_v16, %v4373_v18  ;;  %2190 = vst [vmem:[#allocation16 + $0x38] sm:$0xff] %v2174_v54 }
 0x5f2   : > { %v2177_v48 = vadd.f32 %v2390_v31, %v2154_v43  ;;  %v2178_v2 = vadd.f32 %v2390_v31, %v2155_v57  ;;  %v2179_v36 = vadd.f32 %v2390_v31, %v2156_v42  ;;  %v2159_v24 = vadd.f32 %v2143_v56, %v4378_v4  ;;  %2191 = vst [vmem:[#allocation16 + $0x40] sm:$0xff] %v2175_v47 }
 0x5f3   : > { %2192 = vst [vmem:[#allocation16 + $0x48] sm:$0xff] %v2176_v39  ;;  %v2180_v7 = vadd.f32 %v2390_v31, %v2157_v41  ;;  %v2181_v30 = vadd.f32 %v2390_v31, %v2158_v63 }
 0x5f4   : > { %2193 = vst [vmem:[#allocation16 + $0x50] sm:$0xff] %v2177_v48  ;;  %2194 = vst [vmem:[#allocation16 + $0x58] sm:$0xff] %v2178_v2  ;;  %v2182_v34 = vadd.f32 %v2390_v31, %v2159_v24 }
 0x5f5   : > { %2195 = vst [vmem:[#allocation16 + $0x60] sm:$0xff] %v2179_v36  ;;  %2196 = vst [vmem:[#allocation16 + $0x68] sm:$0xff] %v2180_v7 }
 0x5f6   : > { %2197 = vst [vmem:[#allocation16 + $0x70] sm:$0xff] %v2181_v30  ;;  %2198 = vst [vmem:[#allocation16 + $0x78] sm:$0xff] %v2182_v34 }
 0x5f7 PF: > { %p2704_p1 = scmp.eq.s32.totalorder %s3353_s30, 1  ;;  %s3280_s27 = smov [#allocation16]  }
 0x5f8   : > { %s2208_s23 = sshll.u32 %s3280_s27, 4  ;;  %s2209_s23 = int_to_ptr.vmem [resolvable:$true] %s2208_s23 }
 0x5f9   : > { %s3164_s9 = scalar_lea.vmem %s2209_s23, 2048  ;;  %p3171_p11 = scmp.lt.s32.totalorder %s2209_s23, %s2209_s23 }
 0x5fa   : > { %p3165_p3 = scmp.ne.s32.totalorder %s2209_s23, %s3164_s9  ;;  %p3172_p12 = scmp.lt.s32.totalorder %s3164_s9, %s3164_s9 }
 0x5fc   : > { %p3166_p8 = pnand %p3165_p3, %p2704_p1  ;;  %p3173_p13 = por %p3172_p12, %p3171_p11 }
 0x5fe   : > { %p3167_p10 = pneg %p3166_p8 }
 0x600   : > { %p3174_p5 = pnand %p3173_p13, %p3167_p10 }
 0x602   : > { %3177 = shalt.err (!%p3174_p5)
}
 0x603   : > { %s4513_s13 = sld [smem:[#allocation24_spill]] }
 0x609   : > { %s3178_s20 = scalar_lea.hbm %s4513_s13, 2048 }
 0x60a   : > { %p3179_p4 = scmp.ne.s32.totalorder %s4513_s13, %s3178_s20  ;;  %p3184_p9 = scmp.lt.u32.totalorder %s3178_s20, %s4513_s13 }
 0x60c   : > { %p3180_p2 = pnand %p3179_p4, %p2704_p1 }
 0x60e   : > { %p3181_p6 = pneg %p3180_p2 }
 0x610   : > { %p3186_p7 = pnand %p3184_p9, %p3181_p6 }
 0x612   : > { %3189 = shalt.err (!%p3186_p7)
}
 0x613   : > { %s3281_s17 = smov 128  }
 0x614   : > { %2665 = dma.vmem_to_hbm [thread:$0]  (%p2704_p1), %s2209_s23, 2048, %s4513_s13, [#allocation6], %s3281_s17, %s3281_s17, %s3279_s0  }
 0x615   : > { %3235 = dma.done.wait (%p2704_p1), [#allocation6], 2048  }
 0x616   : > { %3237 = vsyncadd (%p2704_p1), [#allocation6], 4294965248 }
 0x617 PF: > { %s22_s29 = sadd.s32 1, %s3260_s29   ;;  %s4514_s24 = smov %s3244_s25 }
 0x618   : > { %p19_p0 = scmp.ge.s32.totalorder %s22_s29, 4   ;;  %s4515_s25 = smov %s3248_s26 }
 0x619   : > { %s4516_s26 = smov %s3538_s22  ;;  %s4517_s27 = smov %s3256_s28 }
 0x61a   : > { %s4518_s28 = smov %s4520_s21  ;;  %21 = sbr.rel (!%p19_p0) target bundleno = 10 (0xa), region = 122 }
 0x621   :  { %2224 = vsyncpa [#allocation5], 1 }
 0x622   :  { %2226 = vsyncpa [#allocation5 + $0x1], 1 }
 0x623   :  { %2227 = vsyncpa [#allocation8], 1 }
 0x624   :  { %2228 = vsyncpa [#allocation11], 1 }
 0x625   :  { %2229 = vsyncpa [#allocation14], 1 }
 0x626   :  { %2230 = vsyncpa [#allocation6], 1 }
 0x627   :  { %2232 = vsyncpa [#allocation6 + $0x1], 1 }

</bundles_post_ra>
